<compile_context>
chip_gen: v7x
topology: tpu7x:2x2x1
jax: 0.10.0
libtpu: 0.0.40
codegen_flags: <defaults>
</compile_context>

<pallas_src>
import functools

import jax
import jax.numpy as jnp
from jax.experimental import pallas as pl
from jax.experimental.pallas import tpu as pltpu

HIDDEN_SIZE = 256
IMAGE_SIZE = 28 * 28      # 784  (logical width, matches the PyTorch module)
LATENT_SIZE = 64          # logical latent width

IMAGE_PAD = 896           # 7 * 128, lane-aligned padded image width
LATENT_PAD = 128          # lane-aligned padded latent width

SUBLANE = 16              # batch rounding (bf16-friendly sublane multiple)
MAX_BATCH_TILE = 256


def _round_up(x, m):
    return (x + m - 1) // m * m


def _auto_batch_tile(B):
    """Pick a batch tile: as large as possible (<=256), >=2 grid steps when B is big."""
    Bp = _round_up(max(B, 1), SUBLANE)
    if Bp <= MAX_BATCH_TILE:
        return Bp                       # single grid step, no wasted steps
    n_tiles = -(-Bp // MAX_BATCH_TILE)  # ceil
    return _round_up(-(-Bp // n_tiles), SUBLANE)


def _discriminator_kernel(
    x_ref,
    w1_ref, b1_ref, w2_ref, b2_ref, w3_ref, b3_ref,      # encoder params
    w4_ref, b4_ref, w5_ref, b5_ref, w6_ref, b6_ref,      # decoder params
    dec_ref, enc_ref,
):
    # x tile arrives as bf16; every matmul runs with bf16 operands on the MXU,
    # accumulating in f32.  Bias / ReLU / tanh are computed in f32.
    x = x_ref[...]

    def dense(h_bf16, w_ref, b_ref):
        acc = jnp.dot(h_bf16, w_ref[...], preferred_element_type=jnp.float32)
        return acc + b_ref[...]

    # ---- encoder: 896(=784 padded) -> 256 -> 256 -> 128(=64 padded) ----
    h = jnp.maximum(dense(x, w1_ref, b1_ref), 0.0)
    h = jnp.maximum(dense(h.astype(jnp.bfloat16), w2_ref, b2_ref), 0.0)
    encoded = dense(h.astype(jnp.bfloat16), w3_ref, b3_ref)

    # ---- decoder: 128 -> 256 -> 256 -> 896 ----
    d = jnp.maximum(dense(encoded.astype(jnp.bfloat16), w4_ref, b4_ref), 0.0)
    d = jnp.maximum(dense(d.astype(jnp.bfloat16), w5_ref, b5_ref), 0.0)
    decoded = jnp.tanh(dense(d.astype(jnp.bfloat16), w6_ref, b6_ref))

    dec_ref[...] = decoded.astype(dec_ref.dtype)
    enc_ref[...] = encoded.astype(enc_ref.dtype)


def _pad_params_for_kernel(params):
    """Zero-pad to lane-aligned widths and cast weights to bf16 (halves weight DMA)."""
    (w1, b1, w2, b2, w3, b3, w4, b4, w5, b5, w6, b6) = params

    def padw(w, rows, cols):
        return jnp.pad(w, ((0, rows - w.shape[0]), (0, cols - w.shape[1])))

    def padb(b, cols):
        return jnp.pad(b, ((0, 0), (0, cols - b.shape[1])))

    w1p = padw(w1, IMAGE_PAD, HIDDEN_SIZE)        # pad K of first matmul (zeros: exact)
    w3p = padw(w3, HIDDEN_SIZE, LATENT_PAD)       # pad latent N (extra cols are zero)
    b3p = padb(b3, LATENT_PAD)
    w4p = padw(w4, LATENT_PAD, HIDDEN_SIZE)       # pad latent K (zeros: exact)
    w6p = padw(w6, HIDDEN_SIZE, IMAGE_PAD)        # pad image N (sliced off outside)
    b6p = padb(b6, IMAGE_PAD)

    ws = tuple(w.astype(jnp.bfloat16) for w in (w1p, w2, w3p, w4p, w5, w6p))
    bs = (b1, b2, b3p, b4, b5, b6p)               # biases stay f32 (tiny, f32 add)
    return ws, bs


@functools.partial(jax.jit, static_argnames=("batch_tile",))
def discriminator_forward(x, params, batch_tile=None):
    """x: (B, 784) float32. Returns (decoded (B, 784), encoded (B, 64))."""
    B, D = x.shape
    assert D == IMAGE_SIZE

    bt = _auto_batch_tile(B) if batch_tile is None else batch_tile
    B_pad = _round_up(B, bt)
    grid = (B_pad // bt,)

    (w1, w2, w3, w4, w5, w6), (b1, b2, b3, b4, b5, b6) = _pad_params_for_kernel(params)

    # Zero-pad batch rows + image columns; cast activations to bf16 for the MXU.
    x_pad = jnp.pad(
        x, ((0, B_pad - B), (0, IMAGE_PAD - IMAGE_SIZE))
    ).astype(jnp.bfloat16)

    def full_spec(arr):
        # Whole parameter array, same block every grid step (broadcast).
        return pl.BlockSpec(arr.shape, lambda i: (0, 0))

    dec_p, enc_p = pl.pallas_call(
        _discriminator_kernel,
        out_shape=(
            jax.ShapeDtypeStruct((B_pad, IMAGE_PAD), jnp.float32),
            jax.ShapeDtypeStruct((B_pad, LATENT_PAD), jnp.float32),
        ),
        grid_spec=pltpu.PrefetchScalarGridSpec(
            num_scalar_prefetch=0,
            grid=grid,
            in_specs=[
                pl.BlockSpec((bt, IMAGE_PAD), lambda i: (i, 0)),
                full_spec(w1), full_spec(b1),
                full_spec(w2), full_spec(b2),
                full_spec(w3), full_spec(b3),
                full_spec(w4), full_spec(b4),
                full_spec(w5), full_spec(b5),
                full_spec(w6), full_spec(b6),
            ],
            out_specs=[
                pl.BlockSpec((bt, IMAGE_PAD), lambda i: (i, 0)),
                pl.BlockSpec((bt, LATENT_PAD), lambda i: (i, 0)),
            ],
        ),
        compiler_params=pltpu.CompilerParams(
            dimension_semantics=("parallel",),
            vmem_limit_bytes=32 * 1024 * 1024,
        ),
    )(x_pad, w1, b1, w2, b2, w3, b3, w4, b4, w5, b5, w6, b6)

    decoded = dec_p[:B, :IMAGE_SIZE]
    encoded = enc_p[:B, :LATENT_SIZE]
    return decoded, encoded


def init_params(key):
    """nn.Linear-style init (uniform +-1/sqrt(fan_in)); weights stored (in, out)."""
    dims = [
        (IMAGE_SIZE, HIDDEN_SIZE),   # encoder L1
        (HIDDEN_SIZE, HIDDEN_SIZE),  # encoder L2
        (HIDDEN_SIZE, LATENT_SIZE),  # encoder L3
        (LATENT_SIZE, HIDDEN_SIZE),  # decoder L1
        (HIDDEN_SIZE, HIDDEN_SIZE),  # decoder L2
        (HIDDEN_SIZE, IMAGE_SIZE),   # decoder L3
    ]
    params = []
    for fan_in, fan_out in dims:
        key, kw, kb = jax.random.split(key, 3)
        bound = 1.0 / (fan_in ** 0.5)
        w = jax.random.uniform(kw, (fan_in, fan_out), jnp.float32, -bound, bound)
        b = jax.random.uniform(kb, (1, fan_out), jnp.float32, -bound, bound)
        params += [w, b]
    return tuple(params)


def _reference_forward(x, params):
    (w1, b1, w2, b2, w3, b3, w4, b4, w5, b5, w6, b6) = params
    h = jnp.maximum(x @ w1 + b1, 0.0)
    h = jnp.maximum(h @ w2 + b2, 0.0)
    enc = h @ w3 + b3
    d = jnp.maximum(enc @ w4 + b4, 0.0)
    d = jnp.maximum(d @ w5 + b5, 0.0)
    dec = jnp.tanh(d @ w6 + b6)
    return dec, enc


if __name__ == "__main__":
    key = jax.random.PRNGKey(0)
    k_param, k_x = jax.random.split(key)

    params = init_params(k_param)
    B = 8
    x = jax.random.normal(k_x, (B, IMAGE_SIZE), jnp.float32)

    decoded, encoded = discriminator_forward(x, params)
    decoded, encoded = jax.block_until_ready((decoded, encoded))

    # sanity check against a pure-JAX f32 reference (tolerances loosened because
    # the kernel runs its matmuls with bf16 operands / f32 accumulation)
    ref_dec, ref_enc = _reference_forward(x, params)
    assert decoded.shape == (B, IMAGE_SIZE) and encoded.shape == (B, LATENT_SIZE)
    assert jnp.allclose(decoded, ref_dec, atol=5e-2, rtol=5e-2)
    assert jnp.allclose(encoded, ref_enc, atol=5e-2, rtol=5e-2)

    print("KERNEL_OK")
</pallas_src>

<mosaic_0001>
module attributes {stable_mosaic.version = 11 : i64} {
  func.func @_discriminator_kernel(%arg0: i32, %arg1: memref<16x896xbf16, #tpu.memory_space<vmem>>, %arg2: memref<896x256xbf16, #tpu.memory_space<vmem>>, %arg3: memref<1x256xf32, #tpu.memory_space<vmem>>, %arg4: memref<256x256xbf16, #tpu.memory_space<vmem>>, %arg5: memref<1x256xf32, #tpu.memory_space<vmem>>, %arg6: memref<256x128xbf16, #tpu.memory_space<vmem>>, %arg7: memref<1x128xf32, #tpu.memory_space<vmem>>, %arg8: memref<128x256xbf16, #tpu.memory_space<vmem>>, %arg9: memref<1x256xf32, #tpu.memory_space<vmem>>, %arg10: memref<256x256xbf16, #tpu.memory_space<vmem>>, %arg11: memref<1x256xf32, #tpu.memory_space<vmem>>, %arg12: memref<256x896xbf16, #tpu.memory_space<vmem>>, %arg13: memref<1x896xf32, #tpu.memory_space<vmem>>, %arg14: memref<16x896xf32, #tpu.memory_space<vmem>>, %arg15: memref<16x128xf32, #tpu.memory_space<vmem>>) attributes {dimension_semantics = [#tpu.dimension_semantics<parallel>], iteration_bounds = array<i64: 1>, scalar_prefetch = 0 : i64, scratch_operands = 0 : i64, tpu.core_type = #tpu.core_type<tc>, window_params = [{transform_indices = @transform_0, window_bounds = array<i64: 16, 896>}, {pipeline_mode = #tpu.pipeline_mode<synchronous>, transform_indices = @transform_1, window_bounds = array<i64: 896, 256>}, {pipeline_mode = #tpu.pipeline_mode<synchronous>, transform_indices = @transform_2, window_bounds = array<i64: 1, 256>}, {pipeline_mode = #tpu.pipeline_mode<synchronous>, transform_indices = @transform_3, window_bounds = array<i64: 256, 256>}, {pipeline_mode = #tpu.pipeline_mode<synchronous>, transform_indices = @transform_4, window_bounds = array<i64: 1, 256>}, {pipeline_mode = #tpu.pipeline_mode<synchronous>, transform_indices = @transform_5, window_bounds = array<i64: 256, 128>}, {pipeline_mode = #tpu.pipeline_mode<synchronous>, transform_indices = @transform_6, window_bounds = array<i64: 1, 128>}, {pipeline_mode = #tpu.pipeline_mode<synchronous>, transform_indices = @transform_7, window_bounds = array<i64: 128, 256>}, {pipeline_mode = #tpu.pipeline_mode<synchronous>, transform_indices = @transform_8, window_bounds = array<i64: 1, 256>}, {pipeline_mode = #tpu.pipeline_mode<synchronous>, transform_indices = @transform_9, window_bounds = array<i64: 256, 256>}, {pipeline_mode = #tpu.pipeline_mode<synchronous>, transform_indices = @transform_10, window_bounds = array<i64: 1, 256>}, {pipeline_mode = #tpu.pipeline_mode<synchronous>, transform_indices = @transform_11, window_bounds = array<i64: 256, 896>}, {pipeline_mode = #tpu.pipeline_mode<synchronous>, transform_indices = @transform_12, window_bounds = array<i64: 1, 896>}, {transform_indices = @transform_13, window_bounds = array<i64: 16, 896>}, {transform_indices = @transform_14, window_bounds = array<i64: 16, 128>}]} {
    %c0 = arith.constant 0 : index
    %c0_0 = arith.constant 0 : index
    %0 = vector.load %arg1[%c0, %c0_0] : memref<16x896xbf16, #tpu.memory_space<vmem>>, vector<16x896xbf16>
    %c0_1 = arith.constant 0 : index
    %c0_2 = arith.constant 0 : index
    %1 = vector.load %arg2[%c0_1, %c0_2] : memref<896x256xbf16, #tpu.memory_space<vmem>>, vector<896x256xbf16>
    %cst = arith.constant dense<0.000000e+00> : vector<16x256xf32>
    %2 = tpu.matmul %0, %1, %cst {dimension_numbers = #tpu.dot_dimension_numbers<[1], [0], [0], [1], [0, 0, 1, 1], [], []>} : vector<16x896xbf16>, vector<896x256xbf16>, vector<16x256xf32> -> vector<16x256xf32>
    %c0_3 = arith.constant 0 : index
    %c0_4 = arith.constant 0 : index
    %3 = vector.load %arg3[%c0_3, %c0_4] : memref<1x256xf32, #tpu.memory_space<vmem>>, vector<1x256xf32>
    %4 = vector.broadcast %3 : vector<1x256xf32> to vector<16x256xf32>
    %5 = arith.addf %2, %4 : vector<16x256xf32>
    %cst_5 = arith.constant 0.000000e+00 : f32
    %6 = vector.broadcast %cst_5 : f32 to vector<16x256xf32>
    %7 = arith.maximumf %5, %6 : vector<16x256xf32>
    %8 = arith.truncf %7 : vector<16x256xf32> to vector<16x256xbf16>
    %c0_6 = arith.constant 0 : index
    %c0_7 = arith.constant 0 : index
    %9 = vector.load %arg4[%c0_6, %c0_7] : memref<256x256xbf16, #tpu.memory_space<vmem>>, vector<256x256xbf16>
    %cst_8 = arith.constant dense<0.000000e+00> : vector<16x256xf32>
    %10 = tpu.matmul %8, %9, %cst_8 {dimension_numbers = #tpu.dot_dimension_numbers<[1], [0], [0], [1], [0, 0, 1, 1], [], []>} : vector<16x256xbf16>, vector<256x256xbf16>, vector<16x256xf32> -> vector<16x256xf32>
    %c0_9 = arith.constant 0 : index
    %c0_10 = arith.constant 0 : index
    %11 = vector.load %arg5[%c0_9, %c0_10] : memref<1x256xf32, #tpu.memory_space<vmem>>, vector<1x256xf32>
    %12 = vector.broadcast %11 : vector<1x256xf32> to vector<16x256xf32>
    %13 = arith.addf %10, %12 : vector<16x256xf32>
    %cst_11 = arith.constant 0.000000e+00 : f32
    %14 = vector.broadcast %cst_11 : f32 to vector<16x256xf32>
    %15 = arith.maximumf %13, %14 : vector<16x256xf32>
    %16 = arith.truncf %15 : vector<16x256xf32> to vector<16x256xbf16>
    %c0_12 = arith.constant 0 : index
    %c0_13 = arith.constant 0 : index
    %17 = vector.load %arg6[%c0_12, %c0_13] : memref<256x128xbf16, #tpu.memory_space<vmem>>, vector<256x128xbf16>
    %cst_14 = arith.constant dense<0.000000e+00> : vector<16x128xf32>
    %18 = tpu.matmul %16, %17, %cst_14 {dimension_numbers = #tpu.dot_dimension_numbers<[1], [0], [0], [1], [0, 0, 1, 1], [], []>} : vector<16x256xbf16>, vector<256x128xbf16>, vector<16x128xf32> -> vector<16x128xf32>
    %c0_15 = arith.constant 0 : index
    %c0_16 = arith.constant 0 : index
    %19 = vector.load %arg7[%c0_15, %c0_16] : memref<1x128xf32, #tpu.memory_space<vmem>>, vector<1x128xf32>
    %20 = vector.broadcast %19 : vector<1x128xf32> to vector<16x128xf32>
    %21 = arith.addf %18, %20 : vector<16x128xf32>
    %22 = arith.truncf %21 : vector<16x128xf32> to vector<16x128xbf16>
    %c0_17 = arith.constant 0 : index
    %c0_18 = arith.constant 0 : index
    %23 = vector.load %arg8[%c0_17, %c0_18] : memref<128x256xbf16, #tpu.memory_space<vmem>>, vector<128x256xbf16>
    %cst_19 = arith.constant dense<0.000000e+00> : vector<16x256xf32>
    %24 = tpu.matmul %22, %23, %cst_19 {dimension_numbers = #tpu.dot_dimension_numbers<[1], [0], [0], [1], [0, 0, 1, 1], [], []>} : vector<16x128xbf16>, vector<128x256xbf16>, vector<16x256xf32> -> vector<16x256xf32>
    %c0_20 = arith.constant 0 : index
    %c0_21 = arith.constant 0 : index
    %25 = vector.load %arg9[%c0_20, %c0_21] : memref<1x256xf32, #tpu.memory_space<vmem>>, vector<1x256xf32>
    %26 = vector.broadcast %25 : vector<1x256xf32> to vector<16x256xf32>
    %27 = arith.addf %24, %26 : vector<16x256xf32>
    %cst_22 = arith.constant 0.000000e+00 : f32
    %28 = vector.broadcast %cst_22 : f32 to vector<16x256xf32>
    %29 = arith.maximumf %27, %28 : vector<16x256xf32>
    %30 = arith.truncf %29 : vector<16x256xf32> to vector<16x256xbf16>
    %c0_23 = arith.constant 0 : index
    %c0_24 = arith.constant 0 : index
    %31 = vector.load %arg10[%c0_23, %c0_24] : memref<256x256xbf16, #tpu.memory_space<vmem>>, vector<256x256xbf16>
    %cst_25 = arith.constant dense<0.000000e+00> : vector<16x256xf32>
    %32 = tpu.matmul %30, %31, %cst_25 {dimension_numbers = #tpu.dot_dimension_numbers<[1], [0], [0], [1], [0, 0, 1, 1], [], []>} : vector<16x256xbf16>, vector<256x256xbf16>, vector<16x256xf32> -> vector<16x256xf32>
    %c0_26 = arith.constant 0 : index
    %c0_27 = arith.constant 0 : index
    %33 = vector.load %arg11[%c0_26, %c0_27] : memref<1x256xf32, #tpu.memory_space<vmem>>, vector<1x256xf32>
    %34 = vector.broadcast %33 : vector<1x256xf32> to vector<16x256xf32>
    %35 = arith.addf %32, %34 : vector<16x256xf32>
    %cst_28 = arith.constant 0.000000e+00 : f32
    %36 = vector.broadcast %cst_28 : f32 to vector<16x256xf32>
    %37 = arith.maximumf %35, %36 : vector<16x256xf32>
    %38 = arith.truncf %37 : vector<16x256xf32> to vector<16x256xbf16>
    %c0_29 = arith.constant 0 : index
    %c0_30 = arith.constant 0 : index
    %39 = vector.load %arg12[%c0_29, %c0_30] : memref<256x896xbf16, #tpu.memory_space<vmem>>, vector<256x896xbf16>
    %cst_31 = arith.constant dense<0.000000e+00> : vector<16x896xf32>
    %40 = tpu.matmul %38, %39, %cst_31 {dimension_numbers = #tpu.dot_dimension_numbers<[1], [0], [0], [1], [0, 0, 1, 1], [], []>} : vector<16x256xbf16>, vector<256x896xbf16>, vector<16x896xf32> -> vector<16x896xf32>
    %c0_32 = arith.constant 0 : index
    %c0_33 = arith.constant 0 : index
    %41 = vector.load %arg13[%c0_32, %c0_33] : memref<1x896xf32, #tpu.memory_space<vmem>>, vector<1x896xf32>
    %42 = vector.broadcast %41 : vector<1x896xf32> to vector<16x896xf32>
    %43 = arith.addf %40, %42 : vector<16x896xf32>
    %44 = math.tanh %43 : vector<16x896xf32>
    %c0_34 = arith.constant 0 : index
    %c0_35 = arith.constant 0 : index
    %45 = vector.load %arg14[%c0_34, %c0_35] : memref<16x896xf32, #tpu.memory_space<vmem>>, vector<16x896xf32>
    tpu.vector_store %arg14[%c0_34, %c0_35], %44 {strides = array<i32>} : memref<16x896xf32, #tpu.memory_space<vmem>>, vector<16x896xf32>,
    %c0_36 = arith.constant 0 : index
    %c0_37 = arith.constant 0 : index
    %46 = vector.load %arg15[%c0_36, %c0_37] : memref<16x128xf32, #tpu.memory_space<vmem>>, vector<16x128xf32>
    tpu.vector_store %arg15[%c0_36, %c0_37], %21 {strides = array<i32>} : memref<16x128xf32, #tpu.memory_space<vmem>>, vector<16x128xf32>,
    return
  }
  func.func @transform_0(%arg0: i32) -> (i32, i32) {
    %c0_i32 = arith.constant 0 : i32
    %c0_i32_0 = arith.constant 0 : i32
    return %arg0, %c0_i32 : i32, i32
  }
  func.func @transform_1(%arg0: i32) -> (i32, i32) {
    %c0_i32 = arith.constant 0 : i32
    %c0_i32_0 = arith.constant 0 : i32
    %c0_i32_1 = arith.constant 0 : i32
    return %c0_i32, %c0_i32_0 : i32, i32
  }
  func.func @transform_2(%arg0: i32) -> (i32, i32) {
    %c0_i32 = arith.constant 0 : i32
    %c0_i32_0 = arith.constant 0 : i32
    %c0_i32_1 = arith.constant 0 : i32
    return %c0_i32, %c0_i32_0 : i32, i32
  }
  func.func @transform_3(%arg0: i32) -> (i32, i32) {
    %c0_i32 = arith.constant 0 : i32
    %c0_i32_0 = arith.constant 0 : i32
    %c0_i32_1 = arith.constant 0 : i32
    return %c0_i32, %c0_i32_0 : i32, i32
  }
  func.func @transform_4(%arg0: i32) -> (i32, i32) {
    %c0_i32 = arith.constant 0 : i32
    %c0_i32_0 = arith.constant 0 : i32
    %c0_i32_1 = arith.constant 0 : i32
    return %c0_i32, %c0_i32_0 : i32, i32
  }
  func.func @transform_5(%arg0: i32) -> (i32, i32) {
    %c0_i32 = arith.constant 0 : i32
    %c0_i32_0 = arith.constant 0 : i32
    %c0_i32_1 = arith.constant 0 : i32
    return %c0_i32, %c0_i32_0 : i32, i32
  }
  func.func @transform_6(%arg0: i32) -> (i32, i32) {
    %c0_i32 = arith.constant 0 : i32
    %c0_i32_0 = arith.constant 0 : i32
    %c0_i32_1 = arith.constant 0 : i32
    return %c0_i32, %c0_i32_0 : i32, i32
  }
  func.func @transform_7(%arg0: i32) -> (i32, i32) {
    %c0_i32 = arith.constant 0 : i32
    %c0_i32_0 = arith.constant 0 : i32
    %c0_i32_1 = arith.constant 0 : i32
    return %c0_i32, %c0_i32_0 : i32, i32
  }
  func.func @transform_8(%arg0: i32) -> (i32, i32) {
    %c0_i32 = arith.constant 0 : i32
    %c0_i32_0 = arith.constant 0 : i32
    %c0_i32_1 = arith.constant 0 : i32
    return %c0_i32, %c0_i32_0 : i32, i32
  }
  func.func @transform_9(%arg0: i32) -> (i32, i32) {
    %c0_i32 = arith.constant 0 : i32
    %c0_i32_0 = arith.constant 0 : i32
    %c0_i32_1 = arith.constant 0 : i32
    return %c0_i32, %c0_i32_0 : i32, i32
  }
  func.func @transform_10(%arg0: i32) -> (i32, i32) {
    %c0_i32 = arith.constant 0 : i32
    %c0_i32_0 = arith.constant 0 : i32
    %c0_i32_1 = arith.constant 0 : i32
    return %c0_i32, %c0_i32_0 : i32, i32
  }
  func.func @transform_11(%arg0: i32) -> (i32, i32) {
    %c0_i32 = arith.constant 0 : i32
    %c0_i32_0 = arith.constant 0 : i32
    %c0_i32_1 = arith.constant 0 : i32
    return %c0_i32, %c0_i32_0 : i32, i32
  }
  func.func @transform_12(%arg0: i32) -> (i32, i32) {
    %c0_i32 = arith.constant 0 : i32
    %c0_i32_0 = arith.constant 0 : i32
    %c0_i32_1 = arith.constant 0 : i32
    return %c0_i32, %c0_i32_0 : i32, i32
  }
  func.func @transform_13(%arg0: i32) -> (i32, i32) {
    %c0_i32 = arith.constant 0 : i32
    %c0_i32_0 = arith.constant 0 : i32
    return %arg0, %c0_i32 : i32, i32
  }
  func.func @transform_14(%arg0: i32) -> (i32, i32) {
    %c0_i32 = arith.constant 0 : i32
    %c0_i32_0 = arith.constant 0 : i32
    return %arg0, %c0_i32 : i32, i32
  }
}

</mosaic_0001>

<bundles_post_ra>
// kernel: discriminator_forward.1
= control target key start
LH: loop header
LB: loop body
LE: loop exit
PB: predicated region body
PF: predicated region fallthrough
CT: control target
= control target key end

     0   :  { %s4796_s1 = inlined_call_operand.vmem [shape: bf16[896,256], index: 1, kind: input, shape index: {}]   ;;  %s4797_s0 = inlined_call_operand.vmem [shape: bf16[16,896], index: 0, kind: input, shape index: {}]   ;;  %s4798_s3 = inlined_call_operand.vmem [shape: bf16[256,256], index: 3, kind: input, shape index: {}]   ;;  %s4799_s5 = inlined_call_operand.vmem [shape: bf16[256,128], index: 5, kind: input, shape index: {}]   ;;  %s4800_s2 = inlined_call_operand.vmem [shape: f32[1,256], index: 2, kind: input, shape index: {}]   ;;  %s4801_s7 = inlined_call_operand.vmem [shape: bf16[128,256], index: 7, kind: input, shape index: {}]   ;;  %s4802_s4 = inlined_call_operand.vmem [shape: f32[1,256], index: 4, kind: input, shape index: {}]   ;;  %s4803_s9 = inlined_call_operand.vmem [shape: bf16[256,256], index: 9, kind: input, shape index: {}]   ;;  %s4804_s6 = inlined_call_operand.vmem [shape: f32[1,128], index: 6, kind: input, shape index: {}]   ;;  %s4805_s14 = inlined_call_operand.vmem [shape: f32[16,128], index: 14, kind: output, shape index: {1}]   ;;  %s4806_s11 = inlined_call_operand.vmem [shape: bf16[256,896], index: 11, kind: input, shape index: {}]   ;;  %s4807_s8 = inlined_call_operand.vmem [shape: f32[1,256], index: 8, kind: input, shape index: {}]   ;;  %s4808_s10 = inlined_call_operand.vmem [shape: f32[1,256], index: 10, kind: input, shape index: {}]   ;;  %s4809_s12 = inlined_call_operand.vmem [shape: f32[1,896], index: 12, kind: input, shape index: {}]   ;;  %s4810_s13 = inlined_call_operand.vmem [shape: f32[16,896], index: 13, kind: output, shape index: {0}]  }
   0x1   :  { %v3131_v0 = vld [vmem:[%s4796_s1 + $0x4] ss:$8 sps:$4 sm:$0xff]   ;;  %v3133_v1 = vld [vmem:[%s4796_s1] ss:$8 sps:$4 sm:$0xff]   ;;  %v3134_v2 = vld [vmem:[%s4796_s1 + $0x14] ss:$8 sps:$4 sm:$0xff]  }
   0x2   :  { %775 = vmatprep.subr.bf16.mxu0 %v3131_v0  ;;  %v3136_v3 = vld [vmem:[%s4796_s1 + $0x10] ss:$8 sps:$4 sm:$0xff]   ;;  %v3137_v4 = vld [vmem:[%s4796_s1 + $0x24] ss:$8 sps:$4 sm:$0xff]   ;;  %v3139_v5 = vld [vmem:[%s4796_s1 + $0x20] ss:$8 sps:$4 sm:$0xff]  }
   0x3   :  { %776 = vmatpush1.bf16.msra.mxu0 %v3133_v1  ;;  %v3140_v6 = vld [vmem:[%s4796_s1 + $0x34] ss:$8 sps:$4 sm:$0xff]   ;;  %v3142_v7 = vld [vmem:[%s4796_s1 + $0x30] ss:$8 sps:$4 sm:$0xff]   ;;  %v3143_v8 = vld [vmem:[%s4796_s1 + $0x44] ss:$8 sps:$4 sm:$0xff]  }
   0x4   :  { %777 = vmatprep.subr.bf16.mxu0 %v3134_v2  ;;  %v3145_v9 = vld [vmem:[%s4796_s1 + $0x40] ss:$8 sps:$4 sm:$0xff]   ;;  %v3146_v10 = vld [vmem:[%s4796_s1 + $0x54] ss:$8 sps:$4 sm:$0xff]   ;;  %v3148_v11 = vld [vmem:[%s4796_s1 + $0x50] ss:$8 sps:$4 sm:$0xff]  }
   0x5   :  { %v3149_v12 = vld [vmem:[%s4796_s1 + $0x64] ss:$8 sps:$4 sm:$0xff]   ;;  %v3151_v14 = vld [vmem:[%s4796_s1 + $0x60] ss:$8 sps:$4 sm:$0xff]   ;;  %v3152_v15 = vld [vmem:[%s4796_s1 + $0x74] ss:$8 sps:$4 sm:$0xff]  }
   0x6   :  { %v3181_v13 = vld [vmem:[%s4797_s0 + $0x4] ss:$28 sps:$4 sm:$0xff]   ;;  %v3154_v16 = vld [vmem:[%s4796_s1 + $0x70] ss:$8 sps:$4 sm:$0xff]   ;;  %v3158_v19 = vld [vmem:[%s4796_s1 + $0x94] ss:$8 sps:$4 sm:$0xff]  }
   0x7   :  { %778 = vmatpush1.bf16.msra.mxu0 %v3136_v3  ;;  %807 = vmatprep.mubr.bf16.mxu0 %v3181_v13  ;;  %v3155_v17 = vld [vmem:[%s4796_s1 + $0x84] ss:$8 sps:$4 sm:$0xff]   ;;  %v3157_v18 = vld [vmem:[%s4796_s1 + $0x80] ss:$8 sps:$4 sm:$0xff]   ;;  %v3160_v20 = vld [vmem:[%s4796_s1 + $0x90] ss:$8 sps:$4 sm:$0xff]  }
   0x8   :  { %779 = vmatprep.subr.bf16.mxu0 %v3137_v4  ;;  %v3161_v21 = vld [vmem:[%s4796_s1 + $0xa4] ss:$8 sps:$4 sm:$0xff]   ;;  %v3163_v22 = vld [vmem:[%s4796_s1 + $0xa0] ss:$8 sps:$4 sm:$0xff]   ;;  %v3164_v23 = vld [vmem:[%s4796_s1 + $0xb4] ss:$8 sps:$4 sm:$0xff]  }
   0x9   :  { %v3166_v24 = vld [vmem:[%s4796_s1 + $0xb0] ss:$8 sps:$4 sm:$0xff]   ;;  %v3167_v25 = vld [vmem:[%s4796_s1 + $0xc4] ss:$8 sps:$4 sm:$0xff]   ;;  %v3169_v26 = vld [vmem:[%s4796_s1 + $0xc0] ss:$8 sps:$4 sm:$0xff]  }
   0xa   :  { %v3170_v27 = vld [vmem:[%s4796_s1 + $0xd4] ss:$8 sps:$4 sm:$0xff]   ;;  %v3172_v28 = vld [vmem:[%s4796_s1 + $0xd0] ss:$8 sps:$4 sm:$0xff]   ;;  %v3173_v29 = vld [vmem:[%s4796_s1 + $0xe4] ss:$8 sps:$4 sm:$0xff]  }
   0xb   :  { %780 = vmatpush1.bf16.msra.mxu0 %v3139_v5  ;;  %v3175_v30 = vld [vmem:[%s4796_s1 + $0xe0] ss:$8 sps:$4 sm:$0xff]   ;;  %v3176_v31 = vld [vmem:[%s4796_s1 + $0xf4] ss:$8 sps:$4 sm:$0xff]   ;;  %v3178_v32 = vld [vmem:[%s4796_s1 + $0xf0] ss:$8 sps:$4 sm:$0xff]  }
   0xc   :  { %781 = vmatprep.subr.bf16.mxu0 %v3140_v6  ;;  %v3184_v33 = vld [vmem:[%s4796_s1 + $0x104] ss:$8 sps:$4 sm:$0xff]   ;;  %v3179_v34 = vld [vmem:[%s4797_s0] ss:$28 sps:$4 sm:$0xff]   ;;  %v3185_v38 = vld [vmem:[%s4796_s1 + $0x110] ss:$8 sps:$4 sm:$0xff]  }
   0xd   :  { %v3182_v35 = vld [vmem:[%s4796_s1 + $0x100] ss:$8 sps:$4 sm:$0xff]   ;;  %v3187_v37 = vld [vmem:[%s4796_s1 + $0x114] ss:$8 sps:$4 sm:$0xff]   ;;  %v3190_v39 = vld [vmem:[%s4796_s1 + $0x124] ss:$8 sps:$4 sm:$0xff]  }
   0xe   :  { %v3232_v36 = vld [vmem:[%s4797_s0 + $0xc] ss:$28 sps:$4 sm:$0xff]   ;;  %v3193_v41 = vld [vmem:[%s4796_s1 + $0x134] ss:$8 sps:$4 sm:$0xff]   ;;  %v3191_v42 = vld [vmem:[%s4796_s1 + $0x130] ss:$8 sps:$4 sm:$0xff]  }
   0xf   :  { %782 = vmatpush1.bf16.msra.mxu0 %v3142_v7  ;;  %v3188_v40 = vld [vmem:[%s4796_s1 + $0x120] ss:$8 sps:$4 sm:$0xff]   ;;  %v3196_v43 = vld [vmem:[%s4796_s1 + $0x144] ss:$8 sps:$4 sm:$0xff]   ;;  %v3199_v45 = vld [vmem:[%s4796_s1 + $0x154] ss:$8 sps:$4 sm:$0xff]  }
  0x10   :  { %783 = vmatprep.subr.bf16.mxu0 %v3143_v8  ;;  %v3194_v44 = vld [vmem:[%s4796_s1 + $0x140] ss:$8 sps:$4 sm:$0xff]   ;;  %v3197_v46 = vld [vmem:[%s4796_s1 + $0x150] ss:$8 sps:$4 sm:$0xff]   ;;  %v3202_v47 = vld [vmem:[%s4796_s1 + $0x164] ss:$8 sps:$4 sm:$0xff]  }
  0x11   :  { %v3200_v48 = vld [vmem:[%s4796_s1 + $0x160] ss:$8 sps:$4 sm:$0xff]   ;;  %v3205_v49 = vld [vmem:[%s4796_s1 + $0x174] ss:$8 sps:$4 sm:$0xff]   ;;  %v3203_v50 = vld [vmem:[%s4796_s1 + $0x170] ss:$8 sps:$4 sm:$0xff]  }
  0x12   :  { %v3208_v51 = vld [vmem:[%s4796_s1 + $0x184] ss:$8 sps:$4 sm:$0xff]   ;;  %v3206_v52 = vld [vmem:[%s4796_s1 + $0x180] ss:$8 sps:$4 sm:$0xff]   ;;  %v3211_v53 = vld [vmem:[%s4796_s1 + $0x194] ss:$8 sps:$4 sm:$0xff]  }
  0x13   :  { %784 = vmatpush1.bf16.msra.mxu0 %v3145_v9  ;;  %v3209_v54 = vld [vmem:[%s4796_s1 + $0x190] ss:$8 sps:$4 sm:$0xff]   ;;  %v3214_v55 = vld [vmem:[%s4796_s1 + $0x1a4] ss:$8 sps:$4 sm:$0xff]   ;;  %v3311_v57 = vld [vmem:[%s4798_s3] ss:$8 sps:$4 sm:$0xff]  }
  0x14   :  { %785 = vmatprep.subr.bf16.mxu0 %v3146_v10  ;;  %v3309_v56 = vld [vmem:[%s4798_s3 + $0x4] ss:$8 sps:$4 sm:$0xff]   ;;  %v3312_v58 = vld [vmem:[%s4798_s3 + $0x14] ss:$8 sps:$4 sm:$0xff]   ;;  %v3212_v59 = vld [vmem:[%s4796_s1 + $0x1a0] ss:$8 sps:$4 sm:$0xff]  }
  0x15   :  { %1157 = vmatprep.subr.bf16.mxu1 %v3309_v56  ;;  %v3314_v60 = vld [vmem:[%s4798_s3 + $0x10] ss:$8 sps:$4 sm:$0xff]   ;;  %v3315_v61 = vld [vmem:[%s4798_s3 + $0x24] ss:$8 sps:$4 sm:$0xff]   ;;  %v3217_v62 = vld [vmem:[%s4796_s1 + $0x1b4] ss:$8 sps:$4 sm:$0xff]  }
  0x16   :  { %1158 = vmatpush1.bf16.msra.mxu1 %v3311_v57  ;;  %v3215_v63 = vld [vmem:[%s4796_s1 + $0x1b0] ss:$8 sps:$4 sm:$0xff]   ;;  %v3317_v0 = vld [vmem:[%s4798_s3 + $0x20] ss:$8 sps:$4 sm:$0xff]   ;;  %v3318_v1 = vld [vmem:[%s4798_s3 + $0x34] ss:$8 sps:$4 sm:$0xff]  }
  0x17   :  { %786 = vmatpush1.bf16.msra.mxu0 %v3148_v11  ;;  %1159 = vmatprep.subr.bf16.mxu1 %v3312_v58  ;;  %v3220_v2 = vld [vmem:[%s4796_s1 + $0x1c4] ss:$8 sps:$4 sm:$0xff]   ;;  %v3218_v3 = vld [vmem:[%s4796_s1 + $0x1c0] ss:$8 sps:$4 sm:$0xff]   ;;  %v3320_v4 = vld [vmem:[%s4798_s3 + $0x30] ss:$8 sps:$4 sm:$0xff]  }
  0x18   :  { %787 = vmatprep.subr.bf16.mxu0 %v3149_v12  ;;  %v3321_v5 = vld [vmem:[%s4798_s3 + $0x44] ss:$8 sps:$4 sm:$0xff]   ;;  %v3223_v6 = vld [vmem:[%s4796_s1 + $0x1d4] ss:$8 sps:$4 sm:$0xff]   ;;  %v3221_v7 = vld [vmem:[%s4796_s1 + $0x1d0] ss:$8 sps:$4 sm:$0xff]  }
  0x19   :  { %v3323_v8 = vld [vmem:[%s4798_s3 + $0x40] ss:$8 sps:$4 sm:$0xff]   ;;  %v3324_v9 = vld [vmem:[%s4798_s3 + $0x54] ss:$8 sps:$4 sm:$0xff]   ;;  %v3226_v10 = vld [vmem:[%s4796_s1 + $0x1e4] ss:$8 sps:$4 sm:$0xff]  }
  0x1a   :  { %1160 = vmatpush1.bf16.msra.mxu1 %v3314_v60  ;;  %v3326_v11 = vld [vmem:[%s4798_s3 + $0x50] ss:$8 sps:$4 sm:$0xff]   ;;  %v3224_v12 = vld [vmem:[%s4796_s1 + $0x1e0] ss:$8 sps:$4 sm:$0xff]   ;;  %v3327_v13 = vld [vmem:[%s4798_s3 + $0x64] ss:$8 sps:$4 sm:$0xff]  }
  0x1b   :  { %788 = vmatpush1.bf16.msra.mxu0 %v3151_v14  ;;  %1161 = vmatprep.subr.bf16.mxu1 %v3315_v61  ;;  %v3229_v14 = vld [vmem:[%s4796_s1 + $0x1f4] ss:$8 sps:$4 sm:$0xff]   ;;  %v3271_v56 = vld [vmem:[%s4796_s1 + $0x2c4] ss:$8 sps:$4 sm:$0xff]   ;;  %v3269_v57 = vld [vmem:[%s4796_s1 + $0x2c0] ss:$8 sps:$4 sm:$0xff]  }
  0x1c   :  { %789 = vmatprep.subr.bf16.mxu0 %v3152_v15  ;;  %v3329_v15 = vld [vmem:[%s4798_s3 + $0x60] ss:$8 sps:$4 sm:$0xff]   ;;  %v3274_v58 = vld [vmem:[%s4796_s1 + $0x2d4] ss:$8 sps:$4 sm:$0xff]   ;;  %v3277_v60 = vld [vmem:[%s4796_s1 + $0x2e4] ss:$8 sps:$4 sm:$0xff]  }
  0x1d   :  { %v3275_v61 = vld [vmem:[%s4796_s1 + $0x2e0] ss:$8 sps:$4 sm:$0xff]  }
  0x1e   :  { %1162 = vmatpush1.bf16.msra.mxu1 %v3317_v0  ;;  %v3286_v0 = vld [vmem:[%s4796_s1 + $0x304] ss:$8 sps:$4 sm:$0xff]  }
  0x1f   :  { %790 = vmatpush1.bf16.msra.mxu0 %v3154_v16  ;;  %1163 = vmatprep.subr.bf16.mxu1 %v3318_v1  ;;  %v3227_v16 = vld [vmem:[%s4796_s1 + $0x1f0] ss:$8 sps:$4 sm:$0xff]  }
  0x20   :  { %791 = vmatprep.subr.bf16.mxu0 %v3155_v17  ;;  %v3330_v17 = vld [vmem:[%s4798_s3 + $0x74] ss:$8 sps:$4 sm:$0xff]   ;;  %v3281_v1 = vld [vmem:[%s4797_s0 + $0x10] ss:$28 sps:$4 sm:$0xff]  }
  0x22   :  { %1164 = vmatpush1.bf16.msra.mxu1 %v3320_v4  ;;  %v3287_v4 = vld [vmem:[%s4796_s1 + $0x310] ss:$8 sps:$4 sm:$0xff]  }
  0x23   :  { %792 = vmatpush1.bf16.msra.mxu0 %v3157_v18  ;;  %1165 = vmatprep.subr.bf16.mxu1 %v3321_v5  ;;  %v3235_v18 = vld [vmem:[%s4796_s1 + $0x204] ss:$8 sps:$4 sm:$0xff]   ;;  %v3633_v5 = vmov 0  }
  0x24   :  { %793 = vmatprep.subr.bf16.mxu0 %v3158_v19  ;;  %v3230_v19 = vld [vmem:[%s4797_s0 + $0x8] ss:$28 sps:$4 sm:$0xff]  }
  0x26   :  { %1166 = vmatpush1.bf16.msra.mxu1 %v3323_v8  ;;  %v3295_v8 = vld [vmem:[%s4796_s1 + $0x334] ss:$8 sps:$4 sm:$0xff]  }
  0x27   :  { %794 = vmatpush1.bf16.msra.mxu0 %v3160_v20  ;;  %1167 = vmatprep.subr.bf16.mxu1 %v3324_v9  ;;  %v3332_v20 = vld [vmem:[%s4798_s3 + $0x70] ss:$8 sps:$4 sm:$0xff]  }
  0x28   :  { %795 = vmatprep.subr.bf16.mxu0 %v3161_v21  ;;  %v3233_v21 = vld [vmem:[%s4796_s1 + $0x200] ss:$8 sps:$4 sm:$0xff]   ;;  %v3293_v9 = vld [vmem:[%s4796_s1 + $0x330] ss:$8 sps:$4 sm:$0xff]  }
  0x2a   :  { %1168 = vmatpush1.bf16.msra.mxu1 %v3326_v11  ;;  %v3296_v11 = vld [vmem:[%s4796_s1 + $0x340] ss:$8 sps:$4 sm:$0xff]  }
  0x2b   :  { %796 = vmatpush1.bf16.msra.mxu0 %v3163_v22  ;;  %1169 = vmatprep.subr.bf16.mxu1 %v3327_v13  ;;  %v3283_v22 = vld [vmem:[%s4797_s0 + $0x14] ss:$28 sps:$4 sm:$0xff]  }
  0x2c   :  { %797 = vmatprep.subr.bf16.mxu0 %v3164_v23  ;;  %v3238_v23 = vld [vmem:[%s4796_s1 + $0x214] ss:$8 sps:$4 sm:$0xff]   ;;  %v3299_v13 = vld [vmem:[%s4796_s1 + $0x350] ss:$8 sps:$4 sm:$0xff]  }
  0x2e   :  { %1170 = vmatpush1.bf16.msra.mxu1 %v3329_v15  ;;  %v3302_v15 = vld [vmem:[%s4796_s1 + $0x360] ss:$8 sps:$4 sm:$0xff]  }
  0x2f   :  { %798 = vmatpush1.bf16.msra.mxu0 %v3166_v24  ;;  %1171 = vmatprep.subr.bf16.mxu1 %v3330_v17  ;;  %v3333_v24 = vld [vmem:[%s4798_s3 + $0x84] ss:$8 sps:$4 sm:$0xff]   ;;  %v3305_v17 = vld [vmem:[%s4796_s1 + $0x370] ss:$8 sps:$4 sm:$0xff]  }
  0x30   :  { %799 = vmatprep.subr.bf16.mxu0 %v3167_v25  ;;  %v3335_v25 = vld [vmem:[%s4798_s3 + $0x80] ss:$8 sps:$4 sm:$0xff]  }
  0x32   :  { %1172 = vmatpush1.bf16.msra.mxu1 %v3332_v20  ;;  %v3351_v20 = vld [vmem:[%s4798_s3 + $0xe4] ss:$8 sps:$4 sm:$0xff]  }
  0x33   :  { %800 = vmatpush1.bf16.msra.mxu0 %v3169_v26  ;;  %v3236_v26 = vld [vmem:[%s4796_s1 + $0x210] ss:$8 sps:$4 sm:$0xff]   ;;  %1173 = vmatprep.subr.bf16.mxu1 %v3333_v24  ;;  %v3357_v24 = vld [vmem:[%s4799_s5 + $0x40] sm:$0xff]  }
  0x34   :  { %801 = vmatprep.subr.bf16.mxu0 %v3170_v27  ;;  %v3336_v27 = vld [vmem:[%s4798_s3 + $0x94] ss:$8 sps:$4 sm:$0xff]  }
  0x36   :  { %1174 = vmatpush1.bf16.msra.mxu1 %v3335_v25  ;;  %v169_v25 = vlaneseq }
  0x37   :  { %802 = vmatpush1.bf16.msra.mxu0 %v3172_v28  ;;  %v3241_v28 = vld [vmem:[%s4796_s1 + $0x224] ss:$8 sps:$4 sm:$0xff]   ;;  %1175 = vmatprep.subr.bf16.mxu1 %v3336_v27 }
  0x38   :  { %803 = vmatprep.subr.bf16.mxu0 %v3173_v29  ;;  %v3338_v29 = vld [vmem:[%s4798_s3 + $0x90] ss:$8 sps:$4 sm:$0xff]  }
  0x3a   :  { %1176 = vmatpush1.bf16.msra.mxu1 %v3338_v29 }
  0x3b   :  { %804 = vmatpush1.bf16.msra.mxu0 %v3175_v30  ;;  %v3239_v30 = vld [vmem:[%s4796_s1 + $0x220] ss:$8 sps:$4 sm:$0xff]  }
  0x3c   :  { %805 = vmatprep.subr.bf16.mxu0 %v3176_v31  ;;  %v3339_v31 = vld [vmem:[%s4798_s3 + $0xa4] ss:$8 sps:$4 sm:$0xff]  }
  0x3d   :  { %1177 = vmatprep.subr.bf16.mxu1 %v3339_v31 }
  0x3f   :  { %806 = vmatpush1.bf16.msra.mxu0 %v3178_v32  ;;  %v3244_v32 = vld [vmem:[%s4796_s1 + $0x234] ss:$8 sps:$4 sm:$0xff]  }
  0x40   :  { %818 = vmatprep.subr.bf16.mxu0 %v3184_v33  ;;  %v3341_v33 = vld [vmem:[%s4798_s3 + $0xa0] ss:$8 sps:$4 sm:$0xff]  }
  0x41   :  { %1178 = vmatpush1.bf16.msra.mxu1 %v3341_v33 }
  0x42   :  { %808 = vmatmul.mubr.bf16.vlgmr.msra.gmra.mrb[0].mxu0 %v3179_v34  ;;  %v3242_v34 = vld [vmem:[%s4796_s1 + $0x230] ss:$8 sps:$4 sm:$0xff]  }
  0x43   :  { %819 = vmatpush1.bf16.msra.mxu0 %v3182_v35  ;;  %850 = vmatprep.mubr.bf16.mxu0 %v3232_v36  ;;  %v3342_v35 = vld [vmem:[%s4798_s3 + $0xb4] ss:$8 sps:$4 sm:$0xff]   ;;  %v3247_v36 = vld [vmem:[%s4796_s1 + $0x244] ss:$8 sps:$4 sm:$0xff]  }
  0x44   :  { %820 = vmatprep.subr.bf16.mxu0 %v3187_v37  ;;  %v3344_v37 = vld [vmem:[%s4798_s3 + $0xb0] ss:$8 sps:$4 sm:$0xff]   ;;  %1179 = vmatprep.subr.bf16.mxu1 %v3342_v35 }
  0x45   :  { %1180 = vmatpush1.bf16.msra.mxu1 %v3344_v37 }
  0x47   :  { %821 = vmatpush1.bf16.msra.mxu0 %v3185_v38  ;;  %v3245_v38 = vld [vmem:[%s4796_s1 + $0x240] ss:$8 sps:$4 sm:$0xff]  }
  0x48   :  { %822 = vmatprep.subr.bf16.mxu0 %v3190_v39  ;;  %v3345_v39 = vld [vmem:[%s4798_s3 + $0xc4] ss:$8 sps:$4 sm:$0xff]  }
  0x49   :  { %1181 = vmatprep.subr.bf16.mxu1 %v3345_v39 }
  0x4b   :  { %823 = vmatpush1.bf16.msra.mxu0 %v3188_v40  ;;  %v3250_v40 = vld [vmem:[%s4796_s1 + $0x254] ss:$8 sps:$4 sm:$0xff]  }
  0x4c   :  { %824 = vmatprep.subr.bf16.mxu0 %v3193_v41  ;;  %v3347_v41 = vld [vmem:[%s4798_s3 + $0xc0] ss:$8 sps:$4 sm:$0xff]  }
  0x4d   :  { %1182 = vmatpush1.bf16.msra.mxu1 %v3347_v41 }
  0x4f   :  { %825 = vmatpush1.bf16.msra.mxu0 %v3191_v42  ;;  %v3248_v42 = vld [vmem:[%s4796_s1 + $0x250] ss:$8 sps:$4 sm:$0xff]  }
  0x50   :  { %826 = vmatprep.subr.bf16.mxu0 %v3196_v43  ;;  %v3348_v43 = vld [vmem:[%s4798_s3 + $0xd4] ss:$8 sps:$4 sm:$0xff]  }
  0x51   :  { %1183 = vmatprep.subr.bf16.mxu1 %v3348_v43 }
  0x53   :  { %827 = vmatpush1.bf16.msra.mxu0 %v3194_v44  ;;  %v3253_v44 = vld [vmem:[%s4796_s1 + $0x264] ss:$8 sps:$4 sm:$0xff]  }
  0x54   :  { %828 = vmatprep.subr.bf16.mxu0 %v3199_v45  ;;  %v3251_v45 = vld [vmem:[%s4796_s1 + $0x260] ss:$8 sps:$4 sm:$0xff]  }
  0x57   :  { %829 = vmatpush1.bf16.msra.mxu0 %v3197_v46  ;;  %v3256_v46 = vld [vmem:[%s4796_s1 + $0x274] ss:$8 sps:$4 sm:$0xff]  }
  0x58   :  { %830 = vmatprep.subr.bf16.mxu0 %v3202_v47  ;;  %v3254_v47 = vld [vmem:[%s4796_s1 + $0x270] ss:$8 sps:$4 sm:$0xff]  }
  0x5b   :  { %831 = vmatpush1.bf16.msra.mxu0 %v3200_v48  ;;  %v3259_v48 = vld [vmem:[%s4796_s1 + $0x284] ss:$8 sps:$4 sm:$0xff]  }
  0x5c   :  { %832 = vmatprep.subr.bf16.mxu0 %v3205_v49  ;;  %v3257_v49 = vld [vmem:[%s4796_s1 + $0x280] ss:$8 sps:$4 sm:$0xff]  }
  0x5f   :  { %833 = vmatpush1.bf16.msra.mxu0 %v3203_v50  ;;  %v3262_v50 = vld [vmem:[%s4796_s1 + $0x294] ss:$8 sps:$4 sm:$0xff]  }
  0x60   :  { %834 = vmatprep.subr.bf16.mxu0 %v3208_v51  ;;  %v3260_v51 = vld [vmem:[%s4796_s1 + $0x290] ss:$8 sps:$4 sm:$0xff]  }
  0x63   :  { %835 = vmatpush1.bf16.msra.mxu0 %v3206_v52  ;;  %v3265_v52 = vld [vmem:[%s4796_s1 + $0x2a4] ss:$8 sps:$4 sm:$0xff]  }
  0x64   :  { %836 = vmatprep.subr.bf16.mxu0 %v3211_v53  ;;  %v3263_v53 = vld [vmem:[%s4796_s1 + $0x2a0] ss:$8 sps:$4 sm:$0xff]  }
  0x67   :  { %837 = vmatpush1.bf16.msra.mxu0 %v3209_v54  ;;  %v3268_v54 = vld [vmem:[%s4796_s1 + $0x2b4] ss:$8 sps:$4 sm:$0xff]  }
  0x68   :  { %838 = vmatprep.subr.bf16.mxu0 %v3214_v55  ;;  %v3266_v55 = vld [vmem:[%s4796_s1 + $0x2b0] ss:$8 sps:$4 sm:$0xff]  }
  0x6b   :  { %839 = vmatpush1.bf16.msra.mxu0 %v3212_v59  ;;  %v3272_v59 = vld [vmem:[%s4796_s1 + $0x2d0] ss:$8 sps:$4 sm:$0xff]  }
  0x6c   :  { %840 = vmatprep.subr.bf16.mxu0 %v3217_v62  ;;  %v3280_v62 = vld [vmem:[%s4796_s1 + $0x2f4] ss:$8 sps:$4 sm:$0xff]  }
  0x6f   :  { %841 = vmatpush1.bf16.msra.mxu0 %v3215_v63  ;;  %v3278_v63 = vld [vmem:[%s4796_s1 + $0x2f0] ss:$8 sps:$4 sm:$0xff]  }
  0x70   :  { %842 = vmatprep.subr.bf16.mxu0 %v3220_v2  ;;  %v3284_v2 = vld [vmem:[%s4796_s1 + $0x300] ss:$8 sps:$4 sm:$0xff]  }
  0x73   :  { %843 = vmatpush1.bf16.msra.mxu0 %v3218_v3  ;;  %v3289_v3 = vld [vmem:[%s4796_s1 + $0x314] ss:$8 sps:$4 sm:$0xff]  }
  0x74   :  { %844 = vmatprep.subr.bf16.mxu0 %v3223_v6  ;;  %v3292_v6 = vld [vmem:[%s4796_s1 + $0x324] ss:$8 sps:$4 sm:$0xff]  }
  0x77   :  { %845 = vmatpush1.bf16.msra.mxu0 %v3221_v7  ;;  %v3290_v7 = vld [vmem:[%s4796_s1 + $0x320] ss:$8 sps:$4 sm:$0xff]  }
  0x78   :  { %846 = vmatprep.subr.bf16.mxu0 %v3226_v10  ;;  %v3298_v10 = vld [vmem:[%s4796_s1 + $0x344] ss:$8 sps:$4 sm:$0xff]  }
  0x7b   :  { %847 = vmatpush1.bf16.msra.mxu0 %v3224_v12  ;;  %v3301_v12 = vld [vmem:[%s4796_s1 + $0x354] ss:$8 sps:$4 sm:$0xff]  }
  0x7c   :  { %848 = vmatprep.subr.bf16.mxu0 %v3229_v14  ;;  %v3304_v14 = vld [vmem:[%s4796_s1 + $0x364] ss:$8 sps:$4 sm:$0xff]  }
  0x7f   :  { %849 = vmatpush1.bf16.msra.mxu0 %v3227_v16  ;;  %v3307_v16 = vld [vmem:[%s4796_s1 + $0x374] ss:$8 sps:$4 sm:$0xff]  }
  0x80   :  { %861 = vmatprep.subr.bf16.mxu0 %v3235_v18  ;;  %v3308_v18 = vld [vmem:[%s4797_s0 + $0x18] ss:$28 sps:$4 sm:$0xff]  }
  0x82   :  { %851 = vmatmul.mubr.bf16.vlgmr.msra.gmra.mrb[0].mxu0 %v3230_v19  ;;  %v3350_v19 = vld [vmem:[%s4798_s3 + $0xd0] ss:$8 sps:$4 sm:$0xff]  }
  0x83   :  { %862 = vmatpush1.bf16.msra.mxu0 %v3233_v21  ;;  %893 = vmatprep.mubr.bf16.mxu0 %v3283_v22  ;;  %v3353_v21 = vld [vmem:[%s4798_s3 + $0xe0] ss:$8 sps:$4 sm:$0xff]   ;;  %v3354_v22 = vld [vmem:[%s4798_s3 + $0xf4] ss:$8 sps:$4 sm:$0xff]  }
  0x84   :  { %863 = vmatprep.subr.bf16.mxu0 %v3238_v23  ;;  %1184 = vmatpush1.bf16.msra.mxu1 %v3350_v19  ;;  %v3356_v23 = vld [vmem:[%s4798_s3 + $0xf0] ss:$8 sps:$4 sm:$0xff]   ;;  %v3381_v19 = vld [vmem:[%s4801_s7 + $0x24] ss:$8 sps:$4 sm:$0xff]  }
  0x85   :  { %1185 = vmatprep.subr.bf16.mxu1 %v3351_v20  ;;  %v3379_v20 = vld [vmem:[%s4801_s7 + $0x20] ss:$8 sps:$4 sm:$0xff]  }
  0x87   :  { %864 = vmatpush1.bf16.msra.mxu0 %v3236_v26  ;;  %v4166_v26 = vshrl.u32 %v169_v25, 7  ;;  %v3388_v25 = vld [vmem:[%s4801_s7 + $0x50] ss:$8 sps:$4 sm:$0xff]  }
  0x88   :  { %865 = vmatprep.subr.bf16.mxu0 %v3241_v28  ;;  %1186 = vmatpush1.bf16.msra.mxu1 %v3353_v21  ;;  %v167_v28 = vld [vmem:[%s4800_s2] sm:$0x3]  ;;  %v3384_v21 = vld [vmem:[%s4801_s7 + $0x34] ss:$8 sps:$4 sm:$0xff]  }
  0x89   :  { %1187 = vmatprep.subr.bf16.mxu1 %v3354_v22  ;;  %v4169_v27 = vsub.s32 0, %v4166_v26  ;;  %v4175_v29 = vsub.s32 1, %v4166_v26  ;;  %v3387_v22 = vld [vmem:[%s4801_s7 + $0x44] ss:$8 sps:$4 sm:$0xff]  }
  0x8b   :  { %866 = vmatpush1.bf16.msra.mxu0 %v3239_v30  ;;  %v172_v30 = vrot.slane %v167_v28, %v4169_v27  ;;  %v176_v31 = vrot.slane %v167_v28, %v4175_v29  ;;  %v3393_v28 = vld [vmem:[%s4801_s7 + $0x64] ss:$8 sps:$4 sm:$0xff]  }
  0x8c   :  { %867 = vmatprep.subr.bf16.mxu0 %v3244_v32  ;;  %1188 = vmatpush1.bf16.msra.mxu1 %v3356_v23  ;;  %v3385_v23 = vld [vmem:[%s4801_s7 + $0x40] ss:$8 sps:$4 sm:$0xff]  }
  0x8d   :  { %3070 = vmatprep.subr.bf16.mxu1 %v3357_v24  ;;  %v3390_v24 = vld [vmem:[%s4801_s7 + $0x54] ss:$8 sps:$4 sm:$0xff]  }
  0x8f   :  { %868 = vmatpush1.bf16.msra.mxu0 %v3242_v34 }
  0x90   :  { %869 = vmatprep.subr.bf16.mxu0 %v3247_v36 }
  0x93   :  { %870 = vmatpush1.bf16.msra.mxu0 %v3245_v38 }
  0x94   :  { %871 = vmatprep.subr.bf16.mxu0 %v3250_v40 }
  0x97   :  { %872 = vmatpush1.bf16.msra.mxu0 %v3248_v42 }
  0x98   :  { %873 = vmatprep.subr.bf16.mxu0 %v3253_v44 }
  0x9b   :  { %874 = vmatpush1.bf16.msra.mxu0 %v3251_v45 }
  0x9c   :  { %875 = vmatprep.subr.bf16.mxu0 %v3256_v46  ;;  %v3358_v46 = vld [vmem:[%s4799_s5] sm:$0xff]  }
  0x9f   :  { %876 = vmatpush1.bf16.msra.mxu0 %v3254_v47  ;;  %v3359_v47 = vld [vmem:[%s4799_s5 + $0x48] sm:$0xff]  }
  0xa0   :  { %877 = vmatprep.subr.bf16.mxu0 %v3259_v48  ;;  %v3360_v48 = vld [vmem:[%s4799_s5 + $0x8] sm:$0xff]  }
  0xa3   :  { %878 = vmatpush1.bf16.msra.mxu0 %v3257_v49  ;;  %v3361_v49 = vld [vmem:[%s4799_s5 + $0x50] sm:$0xff]  }
  0xa4   :  { %879 = vmatprep.subr.bf16.mxu0 %v3262_v50  ;;  %v3362_v50 = vld [vmem:[%s4799_s5 + $0x10] sm:$0xff]  }
  0xa7   :  { %880 = vmatpush1.bf16.msra.mxu0 %v3260_v51  ;;  %v3363_v51 = vld [vmem:[%s4799_s5 + $0x58] sm:$0xff]  }
  0xa8   :  { %881 = vmatprep.subr.bf16.mxu0 %v3265_v52  ;;  %v3364_v52 = vld [vmem:[%s4799_s5 + $0x18] sm:$0xff]  }
  0xab   :  { %882 = vmatpush1.bf16.msra.mxu0 %v3263_v53  ;;  %v3365_v53 = vld [vmem:[%s4799_s5 + $0x60] sm:$0xff]  }
  0xac   :  { %883 = vmatprep.subr.bf16.mxu0 %v3268_v54  ;;  %v3366_v54 = vld [vmem:[%s4799_s5 + $0x20] sm:$0xff]  }
  0xaf   :  { %884 = vmatpush1.bf16.msra.mxu0 %v3266_v55  ;;  %v3367_v55 = vld [vmem:[%s4799_s5 + $0x68] sm:$0xff]  }
  0xb0   :  { %885 = vmatprep.subr.bf16.mxu0 %v3271_v56  ;;  %v3368_v56 = vld [vmem:[%s4799_s5 + $0x28] sm:$0xff]  }
  0xb3   :  { %886 = vmatpush1.bf16.msra.mxu0 %v3269_v57  ;;  %v3369_v57 = vld [vmem:[%s4799_s5 + $0x70] sm:$0xff]  }
  0xb4   :  { %887 = vmatprep.subr.bf16.mxu0 %v3274_v58  ;;  %v3370_v58 = vld [vmem:[%s4799_s5 + $0x30] sm:$0xff]  }
  0xb7   :  { %888 = vmatpush1.bf16.msra.mxu0 %v3272_v59  ;;  %v3371_v59 = vld [vmem:[%s4799_s5 + $0x78] sm:$0xff]  }
  0xb8   :  { %889 = vmatprep.subr.bf16.mxu0 %v3277_v60  ;;  %v3372_v60 = vld [vmem:[%s4799_s5 + $0x38] sm:$0xff]  }
  0xbb   :  { %890 = vmatpush1.bf16.msra.mxu0 %v3275_v61  ;;  %v3375_v61 = vld [vmem:[%s4801_s7 + $0x4] ss:$8 sps:$4 sm:$0xff]  }
  0xbc   :  { %891 = vmatprep.subr.bf16.mxu0 %v3280_v62  ;;  %v985_v62 = vld [vmem:[%s4802_s4] sm:$0x3] }
  0xbf   :  { %892 = vmatpush1.bf16.msra.mxu0 %v3278_v63  ;;  %v990_v63 = vrot.slane %v985_v62, %v4169_v27 }
  0xc0   :  { %904 = vmatprep.subr.bf16.mxu0 %v3286_v0  ;;  %v994_v0 = vrot.slane %v985_v62, %v4175_v29  ;;  %v3424_v62 = vld [vmem:[%s4803_s9 + $0x90] ss:$8 sps:$4 sm:$0xff]  }
  0xc2   :  { %894 = vmatmul.mubr.bf16.vlgmr.msra.gmra.mrb[0].mxu0 %v3281_v1 }
  0xc3   :  { %905 = vmatpush1.bf16.msra.mxu0 %v3284_v2  ;;  %936 = vmatprep.mubr.bf16.mxu0 %v3633_v5 }
  0xc4   :  { %906 = vmatprep.subr.bf16.mxu0 %v3289_v3 }
  0xc7   :  { %907 = vmatpush1.bf16.msra.mxu0 %v3287_v4 }
  0xc8   :  { %908 = vmatprep.subr.bf16.mxu0 %v3292_v6 }
  0xcb   :  { %909 = vmatpush1.bf16.msra.mxu0 %v3290_v7 }
  0xcc   :  { %910 = vmatprep.subr.bf16.mxu0 %v3295_v8 }
  0xcf   :  { %911 = vmatpush1.bf16.msra.mxu0 %v3293_v9 }
  0xd0   :  { %912 = vmatprep.subr.bf16.mxu0 %v3298_v10 }
  0xd3   :  { %913 = vmatpush1.bf16.msra.mxu0 %v3296_v11 }
  0xd4   :  { %914 = vmatprep.subr.bf16.mxu0 %v3301_v12 }
  0xd7   :  { %915 = vmatpush1.bf16.msra.mxu0 %v3299_v13 }
  0xd8   :  { %916 = vmatprep.subr.bf16.mxu0 %v3304_v14 }
  0xdb   :  { %917 = vmatpush1.bf16.msra.mxu0 %v3302_v15 }
  0xdc   :  { %918 = vmatprep.subr.bf16.mxu0 %v3307_v16  ;;  %v3373_v16 = vld [vmem:[%s4801_s7] ss:$8 sps:$4 sm:$0xff]  }
  0xdf   :  { %919 = vmatpush1.bf16.msra.mxu0 %v3305_v17  ;;  %v3378_v17 = vld [vmem:[%s4801_s7 + $0x14] ss:$8 sps:$4 sm:$0xff]  }
  0xe2   :  { %937 = vmatmul.mubr.bf16.vlgmr.msra.gmra.mrb[0].mxu0 %v3308_v18  ;;  %v3376_v18 = vld [vmem:[%s4801_s7 + $0x10] ss:$8 sps:$4 sm:$0xff]  }
 0x1b5   :  { %v938_v32 = vpop.f32.mrb[0].mxu0 }
 0x1b6   :  { %v3114_v33 = vadd.f32 %v938_v32, %v172_v30  ;;  %v940_v34 = vpop.f32.mrb[1].mxu0  ;;  %v3394_v32 = vld [vmem:[%s4801_s7 + $0x70] ss:$8 sps:$4 sm:$0xff]  }
 0x1b7   :  { %v3115_v35 = vadd.f32 %v940_v34, %v176_v31  ;;  %v942_v36 = vpop.f32.mrb[2].mxu0 }
 0x1b8   :  { %v3116_v37 = vadd.f32 %v942_v36, %v172_v30  ;;  %v944_v38 = vpop.f32.mrb[3].mxu0  ;;  %v947_v40 = vmax.f32 %v3114_v33, 0.0  ;;  %v3391_v30 = vld [vmem:[%s4801_s7 + $0x60] ss:$8 sps:$4 sm:$0xff]   ;;  %v3399_v33 = vld [vmem:[%s4803_s9 + $0x4] ss:$8 sps:$4 sm:$0xff]  }
 0x1b9   :  { %v3117_v39 = vadd.f32 %v944_v38, %v176_v31  ;;  %v948_v42 = vmax.f32 %v3115_v35, 0.0  ;;  %v3396_v31 = vld [vmem:[%s4801_s7 + $0x74] ss:$8 sps:$4 sm:$0xff]   ;;  %v2893_v35 = vld [vmem:[%s4804_s6] ss:$0 sm:$0xff] }
 0x1ba   :  { %v949_v41 = vmax.f32 %v3116_v37, 0.0 }
 0x1bb   :  { %v950_v43 = vmax.f32 %v3117_v39, 0.0 }
 0x1bc   :  { %v951_v44 = vpack.c.bf16 %v949_v41, %v947_v40 }
 0x1bd   :  { %v952_v45 = vpack.c.bf16 %v950_v43, %v948_v42  ;;  %v3397_v43 = vld [vmem:[%s4803_s9] ss:$8 sps:$4 sm:$0xff]  }
 0x1bf   :  { %1189 = vmatprep.mubr.bf16.mxu1 %v952_v45  ;;  %v3402_v45 = vld [vmem:[%s4803_s9 + $0x14] ss:$8 sps:$4 sm:$0xff]  }
 0x1c0   :  { %1190 = vmatmul.mubr.bf16.vlgmr.msra.gmra.mrb[0].mxu1 %v951_v44 }
 0x1c1   :  { %3071 = vmatpush3.bf16.msra.mxu1 %v3358_v46  ;;  %v3400_v46 = vld [vmem:[%s4803_s9 + $0x10] ss:$8 sps:$4 sm:$0xff]  }
 0x1c2   :  { %3072 = vmatprep.subr.bf16.mxu1 %v3359_v47  ;;  %v3405_v47 = vld [vmem:[%s4803_s9 + $0x24] ss:$8 sps:$4 sm:$0xff]  }
 0x1c5   :  { %3073 = vmatpush3.bf16.msra.mxu1 %v3360_v48  ;;  %v3403_v48 = vld [vmem:[%s4803_s9 + $0x20] ss:$8 sps:$4 sm:$0xff]  }
 0x1c6   :  { %3074 = vmatprep.subr.bf16.mxu1 %v3361_v49  ;;  %v3408_v49 = vld [vmem:[%s4803_s9 + $0x34] ss:$8 sps:$4 sm:$0xff]  }
 0x1c9   :  { %3075 = vmatpush3.bf16.msra.mxu1 %v3362_v50  ;;  %v3406_v50 = vld [vmem:[%s4803_s9 + $0x30] ss:$8 sps:$4 sm:$0xff]  }
 0x1ca   :  { %3076 = vmatprep.subr.bf16.mxu1 %v3363_v51  ;;  %v3411_v51 = vld [vmem:[%s4803_s9 + $0x44] ss:$8 sps:$4 sm:$0xff]  }
 0x1cd   :  { %3077 = vmatpush3.bf16.msra.mxu1 %v3364_v52  ;;  %v3409_v52 = vld [vmem:[%s4803_s9 + $0x40] ss:$8 sps:$4 sm:$0xff]  }
 0x1ce   :  { %3078 = vmatprep.subr.bf16.mxu1 %v3365_v53  ;;  %v3414_v53 = vld [vmem:[%s4803_s9 + $0x54] ss:$8 sps:$4 sm:$0xff]  }
 0x1d1   :  { %3079 = vmatpush3.bf16.msra.mxu1 %v3366_v54  ;;  %v3412_v54 = vld [vmem:[%s4803_s9 + $0x50] ss:$8 sps:$4 sm:$0xff]  }
 0x1d2   :  { %3080 = vmatprep.subr.bf16.mxu1 %v3367_v55  ;;  %v3417_v55 = vld [vmem:[%s4803_s9 + $0x64] ss:$8 sps:$4 sm:$0xff]  }
 0x1d5   :  { %3081 = vmatpush3.bf16.msra.mxu1 %v3368_v56  ;;  %v3415_v56 = vld [vmem:[%s4803_s9 + $0x60] ss:$8 sps:$4 sm:$0xff]  }
 0x1d6   :  { %3082 = vmatprep.subr.bf16.mxu1 %v3369_v57  ;;  %v3420_v57 = vld [vmem:[%s4803_s9 + $0x74] ss:$8 sps:$4 sm:$0xff]  }
 0x1d9   :  { %3083 = vmatpush3.bf16.msra.mxu1 %v3370_v58  ;;  %v3418_v58 = vld [vmem:[%s4803_s9 + $0x70] ss:$8 sps:$4 sm:$0xff]  }
 0x1da   :  { %3084 = vmatprep.subr.bf16.mxu1 %v3371_v59  ;;  %v3423_v59 = vld [vmem:[%s4803_s9 + $0x84] ss:$8 sps:$4 sm:$0xff]  }
 0x1dd   :  { %3085 = vmatpush3.bf16.msra.mxu1 %v3372_v60  ;;  %v3421_v60 = vld [vmem:[%s4803_s9 + $0x80] ss:$8 sps:$4 sm:$0xff]  }
 0x1de   :  { %1491 = vmatprep.subr.bf16.mxu1 %v3375_v61  ;;  %v3426_v61 = vld [vmem:[%s4803_s9 + $0x94] ss:$8 sps:$4 sm:$0xff]  }
 0x293   :  { %v1191_v1 = vpop.f32.mrb[0].mxu1 }
 0x294   :  { %v1192_v2 = vadd.f32 %v1191_v1, %v990_v63  ;;  %v1193_v3 = vpop.f32.mrb[1].mxu1  ;;  %v3432_v1 = vld [vmem:[%s4803_s9 + $0xb4] ss:$8 sps:$4 sm:$0xff]  }
 0x295   :  { %v1194_v4 = vadd.f32 %v1193_v3, %v994_v0  ;;  %v1195_v6 = vpop.f32.mrb[2].mxu1  ;;  %v3435_v3 = vld [vmem:[%s4803_s9 + $0xc4] ss:$8 sps:$4 sm:$0xff]  }
 0x296   :  { %v1196_v7 = vadd.f32 %v1195_v6, %v990_v63  ;;  %v1197_v8 = vpop.f32.mrb[3].mxu1  ;;  %v1200_v10 = vmax.f32 %v1192_v2, 0.0  ;;  %v3429_v63 = vld [vmem:[%s4803_s9 + $0xa4] ss:$8 sps:$4 sm:$0xff]   ;;  %v3430_v2 = vld [vmem:[%s4803_s9 + $0xb0] ss:$8 sps:$4 sm:$0xff]  }
 0x297   :  { %v1198_v9 = vadd.f32 %v1197_v8, %v994_v0  ;;  %v1201_v12 = vmax.f32 %v1194_v4, 0.0  ;;  %v3427_v0 = vld [vmem:[%s4803_s9 + $0xa0] ss:$8 sps:$4 sm:$0xff]   ;;  %v3438_v6 = vld [vmem:[%s4803_s9 + $0xd4] ss:$8 sps:$4 sm:$0xff]  }
 0x298   :  { %v1202_v11 = vmax.f32 %v1196_v7, 0.0  ;;  %v3433_v4 = vld [vmem:[%s4803_s9 + $0xc0] ss:$8 sps:$4 sm:$0xff]   ;;  %v3436_v7 = vld [vmem:[%s4803_s9 + $0xd0] ss:$8 sps:$4 sm:$0xff]  }
 0x299   :  { %v1203_v13 = vmax.f32 %v1198_v9, 0.0  ;;  %v3441_v8 = vld [vmem:[%s4803_s9 + $0xe4] ss:$8 sps:$4 sm:$0xff]   ;;  %v3439_v9 = vld [vmem:[%s4803_s9 + $0xe0] ss:$8 sps:$4 sm:$0xff]  }
 0x29a   :  { %v1204_v14 = vpack.c.bf16 %v1202_v11, %v1200_v10  ;;  %v3444_v10 = vld [vmem:[%s4803_s9 + $0xf4] ss:$8 sps:$4 sm:$0xff]   ;;  %v3442_v11 = vld [vmem:[%s4803_s9 + $0xf0] ss:$8 sps:$4 sm:$0xff]  }
 0x29b   :  { %v1205_v15 = vpack.c.bf16 %v1203_v13, %v1201_v12  ;;  %v3447_v12 = vld [vmem:[%s4806_s11 + $0x4] ss:$28 sps:$4 sm:$0xff]  }
 0x29c   :  { %v3448_v13 = vld [vmem:[%s4806_s11 + $0x8] ss:$28 sps:$4 sm:$0xff]  }
 0x29d   :  { %1373 = vmatprep.mubr.bf16.mxu1 %v1205_v15  ;;  %v3454_v15 = vld [vmem:[%s4806_s11 + $0x40] ss:$28 sps:$4 sm:$0xff]  }
 0x29e   :  { %1374 = vmatmul.mubr.bf16.vlgmr.msra.gmra.mrb[4].mxu1 %v1204_v14  ;;  %v3450_v14 = vld [vmem:[%s4806_s11 + $0xc] ss:$28 sps:$4 sm:$0xff]  }
 0x29f   :  { %1492 = vmatpush1.bf16.msra.mxu1 %v3373_v16  ;;  %1523 = vmatprep.mubr.bf16.mxu1 %v3633_v5  ;;  %v3382_v5 = vld [vmem:[%s4801_s7 + $0x30] ss:$8 sps:$4 sm:$0xff]   ;;  %v3456_v16 = vld [vmem:[%s4806_s11 + $0x44] ss:$28 sps:$4 sm:$0xff]  }
 0x2a0   :  { %1493 = vmatprep.subr.bf16.mxu1 %v3378_v17  ;;  %2577 = vmatprep.subr.bf16.mxu0 %v3450_v14  ;;  %v3462_v17 = vld [vmem:[%s4806_s11 + $0x7c] ss:$28 sps:$4 sm:$0xff]  }
 0x2a1   :  { %2578 = vmatpush1.bf16.msra.mxu0 %v3448_v13  ;;  %v3493_v13 = vld [vmem:[%s4806_s11 + $0x1c0] ss:$28 sps:$4 sm:$0xff]  }
 0x2a2   :  { %2579 = vmatprep.subr.bf16.mxu0 %v3456_v16  ;;  %v3501_v14 = vld [vmem:[%s4806_s11 + $0x1fc] ss:$28 sps:$4 sm:$0xff]   ;;  %v3507_v16 = vld [vmem:[%s4806_s11 + $0x234] ss:$28 sps:$4 sm:$0xff]  }
 0x2a3   :  { %1494 = vmatpush1.bf16.msra.mxu1 %v3376_v18  ;;  %v3460_v18 = vld [vmem:[%s4806_s11 + $0x78] ss:$28 sps:$4 sm:$0xff]  }
 0x2a4   :  { %1495 = vmatprep.subr.bf16.mxu1 %v3381_v19  ;;  %v3468_v19 = vld [vmem:[%s4806_s11 + $0xb4] ss:$28 sps:$4 sm:$0xff]  }
 0x2a5   :  { %2580 = vmatpush1.bf16.msra.mxu0 %v3454_v15  ;;  %v3499_v15 = vld [vmem:[%s4806_s11 + $0x1f8] ss:$28 sps:$4 sm:$0xff]  }
 0x2a6   :  { %2581 = vmatprep.subr.bf16.mxu0 %v3462_v17  ;;  %v3505_v17 = vld [vmem:[%s4806_s11 + $0x230] ss:$28 sps:$4 sm:$0xff]  }
 0x2a7   :  { %1496 = vmatpush1.bf16.msra.mxu1 %v3379_v20  ;;  %v3466_v20 = vld [vmem:[%s4806_s11 + $0xb0] ss:$28 sps:$4 sm:$0xff]  }
 0x2a8   :  { %1497 = vmatprep.subr.bf16.mxu1 %v3384_v21  ;;  %v3474_v21 = vld [vmem:[%s4806_s11 + $0xec] ss:$28 sps:$4 sm:$0xff]  }
 0x2a9   :  { %2582 = vmatpush1.bf16.msra.mxu0 %v3460_v18  ;;  %v3513_v18 = vld [vmem:[%s4806_s11 + $0x26c] ss:$28 sps:$4 sm:$0xff]  }
 0x2aa   :  { %2583 = vmatprep.subr.bf16.mxu0 %v3468_v19  ;;  %v3511_v19 = vld [vmem:[%s4806_s11 + $0x268] ss:$28 sps:$4 sm:$0xff]  }
 0x2ab   :  { %1498 = vmatpush1.bf16.msra.mxu1 %v3382_v5  ;;  %v3472_v5 = vld [vmem:[%s4806_s11 + $0xe8] ss:$28 sps:$4 sm:$0xff]  }
 0x2ac   :  { %1499 = vmatprep.subr.bf16.mxu1 %v3387_v22  ;;  %v3480_v22 = vld [vmem:[%s4806_s11 + $0x124] ss:$28 sps:$4 sm:$0xff]  }
 0x2ad   :  { %2584 = vmatpush1.bf16.msra.mxu0 %v3466_v20  ;;  %v3519_v20 = vld [vmem:[%s4806_s11 + $0x2a4] ss:$28 sps:$4 sm:$0xff]  }
 0x2ae   :  { %2585 = vmatprep.subr.bf16.mxu0 %v3474_v21  ;;  %v3517_v21 = vld [vmem:[%s4806_s11 + $0x2a0] ss:$28 sps:$4 sm:$0xff]  }
 0x2af   :  { %1500 = vmatpush1.bf16.msra.mxu1 %v3385_v23  ;;  %v3478_v23 = vld [vmem:[%s4806_s11 + $0x120] ss:$28 sps:$4 sm:$0xff]  }
 0x2b0   :  { %1501 = vmatprep.subr.bf16.mxu1 %v3390_v24  ;;  %v3486_v24 = vld [vmem:[%s4806_s11 + $0x15c] ss:$28 sps:$4 sm:$0xff]  }
 0x2b1   :  { %2586 = vmatpush1.bf16.msra.mxu0 %v3472_v5  ;;  %v3525_v5 = vld [vmem:[%s4806_s11 + $0x2dc] ss:$28 sps:$4 sm:$0xff]  }
 0x2b2   :  { %2587 = vmatprep.subr.bf16.mxu0 %v3480_v22  ;;  %v3523_v22 = vld [vmem:[%s4806_s11 + $0x2d8] ss:$28 sps:$4 sm:$0xff]  }
 0x2b3   :  { %1502 = vmatpush1.bf16.msra.mxu1 %v3388_v25  ;;  %v3484_v25 = vld [vmem:[%s4806_s11 + $0x158] ss:$28 sps:$4 sm:$0xff]  }
 0x2b4   :  { %1503 = vmatprep.subr.bf16.mxu1 %v3393_v28  ;;  %v3492_v28 = vld [vmem:[%s4806_s11 + $0x194] ss:$28 sps:$4 sm:$0xff]  }
 0x2b5   :  { %2588 = vmatpush1.bf16.msra.mxu0 %v3478_v23  ;;  %v3531_v23 = vld [vmem:[%s4806_s11 + $0x314] ss:$28 sps:$4 sm:$0xff]  }
 0x2b6   :  { %2589 = vmatprep.subr.bf16.mxu0 %v3486_v24  ;;  %v3534_v24 = vld [vmem:[%s4806_s11 + $0x31c] ss:$28 sps:$4 sm:$0xff]  }
 0x2b7   :  { %1504 = vmatpush1.bf16.msra.mxu1 %v3391_v30  ;;  %v3490_v30 = vld [vmem:[%s4806_s11 + $0x190] ss:$28 sps:$4 sm:$0xff]  }
 0x2b8   :  { %1505 = vmatprep.subr.bf16.mxu1 %v3396_v31  ;;  %v3498_v31 = vld [vmem:[%s4806_s11 + $0x1cc] ss:$28 sps:$4 sm:$0xff]  }
 0x2b9   :  { %2590 = vmatpush1.bf16.msra.mxu0 %v3484_v25  ;;  %v3529_v25 = vld [vmem:[%s4806_s11 + $0x310] ss:$28 sps:$4 sm:$0xff]  }
 0x2ba   :  { %2591 = vmatprep.subr.bf16.mxu0 %v3492_v28  ;;  %v3532_v28 = vld [vmem:[%s4806_s11 + $0x318] ss:$28 sps:$4 sm:$0xff]  }
 0x2bb   :  { %1506 = vmatpush1.bf16.msra.mxu1 %v3394_v32  ;;  %v3496_v32 = vld [vmem:[%s4806_s11 + $0x1c8] ss:$28 sps:$4 sm:$0xff]  }
 0x2bc   :  { %1744 = vmatprep.subr.bf16.mxu1 %v3399_v33  ;;  %v3504_v33 = vld [vmem:[%s4806_s11 + $0x204] ss:$28 sps:$4 sm:$0xff]  }
 0x2bd   :  { %2592 = vmatpush1.bf16.msra.mxu0 %v3490_v30  ;;  %v3537_v30 = vld [vmem:[%s4806_s11 + $0x34c] ss:$28 sps:$4 sm:$0xff]  }
 0x2be   :  { %2593 = vmatprep.subr.bf16.mxu0 %v3498_v31  ;;  %v3540_v31 = vld [vmem:[%s4806_s11 + $0x354] ss:$28 sps:$4 sm:$0xff]  }
 0x2c1   :  { %2594 = vmatpush1.bf16.msra.mxu0 %v3496_v32  ;;  %v3535_v32 = vld [vmem:[%s4806_s11 + $0x348] ss:$28 sps:$4 sm:$0xff]  }
 0x2c2   :  { %2595 = vmatprep.subr.bf16.mxu0 %v3504_v33  ;;  %v3538_v33 = vld [vmem:[%s4806_s11 + $0x350] ss:$28 sps:$4 sm:$0xff]  }
 0x371   :  { %v3086_v34 = vpop.f32.mrb[4].mxu1 }
 0x372   :  { %v3087_v36 = vpop.f32.mrb[5].mxu1 }
 0x373   :  { %v3088_v37 = vadd.f32 %v3087_v36, %v3086_v34  ;;  %v3089_v38 = vpop.f32.mrb[6].mxu1  ;;  %v3502_v34 = vld [vmem:[%s4806_s11 + $0x200] ss:$28 sps:$4 sm:$0xff]   ;;  %v3508_v36 = vld [vmem:[%s4806_s11 + $0x238] ss:$28 sps:$4 sm:$0xff]  }
 0x374   :  { %v3090_v39 = vpop.f32.mrb[7].mxu1  ;;  %2596 = vmatpush1.bf16.msra.mxu0 %v3502_v34  ;;  %v3543_v34 = vld [vmem:[%s4806_s11 + $0x14] ss:$28 sps:$4 sm:$0xff]  }
 0x375   :  { %v1376_v40 = vadd.f32 %v3088_v37, %v2893_v35  ;;  %v3091_v41 = vadd.f32 %v3090_v39, %v3089_v38  ;;  %v3516_v37 = vld [vmem:[%s4806_s11 + $0x274] ss:$28 sps:$4 sm:$0xff]   ;;  %v3522_v39 = vld [vmem:[%s4806_s11 + $0x2ac] ss:$28 sps:$4 sm:$0xff]  }
 0x376   :  { %v3514_v38 = vld [vmem:[%s4806_s11 + $0x270] ss:$28 sps:$4 sm:$0xff]  }
 0x377   :  { %2732 = vst [vmem:[%s4805_s14] sm:$0xff] %v1376_v40  ;;  %v1379_v42 = vadd.f32 %v3091_v41, %v2893_v35  ;;  %v3510_v35 = vld [vmem:[%s4806_s11 + $0x23c] ss:$28 sps:$4 sm:$0xff]   ;;  %v3528_v41 = vld [vmem:[%s4806_s11 + $0x2e4] ss:$28 sps:$4 sm:$0xff]  }
 0x378   :  { %2597 = vmatprep.subr.bf16.mxu0 %v3510_v35  ;;  %v3544_v35 = vld [vmem:[%s4806_s11 + $0x1d8] ss:$28 sps:$4 sm:$0xff]  }
 0x379   :  { %v1382_v44 = vpack.c.bf16 %v1379_v42, %v1376_v40  ;;  %2733 = vst [vmem:[%s4805_s14 + $0x8] sm:$0xff] %v1379_v42  ;;  %2598 = vmatpush1.bf16.msra.mxu0 %v3508_v36  ;;  %v3520_v40 = vld [vmem:[%s4806_s11 + $0x2a8] ss:$28 sps:$4 sm:$0xff]   ;;  %v3526_v42 = vld [vmem:[%s4806_s11 + $0x2e0] ss:$28 sps:$4 sm:$0xff]  }
 0x37a   :  { %2599 = vmatprep.subr.bf16.mxu0 %v3516_v37  ;;  %v1572_v36 = vld [vmem:[%s4808_s10] sm:$0x3] }
 0x37b   :  { %1524 = vmatmul.mubr.bf16.vlgmr.msra.gmra.mrb[8].mxu1 %v1382_v44  ;;  %v1577_v37 = vrot.slane %v1572_v36, %v4169_v27 }
 0x37c   :  { %1745 = vmatpush1.bf16.msra.mxu1 %v3397_v43  ;;  %v1399_v43 = vld [vmem:[%s4807_s8] sm:$0x3] }
 0x37d   :  { %1746 = vmatprep.subr.bf16.mxu1 %v3402_v45  ;;  %2600 = vmatpush1.bf16.msra.mxu0 %v3514_v38  ;;  %v1404_v44 = vrot.slane %v1399_v43, %v4169_v27  ;;  %v1408_v45 = vrot.slane %v1399_v43, %v4175_v29  ;;  %v1581_v38 = vrot.slane %v1572_v36, %v4175_v29  ;;  %v3604_v36 = vld [vmem:[%s4806_s11 + $0x35c] ss:$28 sps:$4 sm:$0xff]  }
 0x37e   :  { %2601 = vmatprep.subr.bf16.mxu0 %v3522_v39 }
 0x380   :  { %1747 = vmatpush1.bf16.msra.mxu1 %v3400_v46 }
 0x381   :  { %1748 = vmatprep.subr.bf16.mxu1 %v3405_v47  ;;  %2602 = vmatpush1.bf16.msra.mxu0 %v3520_v40 }
 0x382   :  { %2603 = vmatprep.subr.bf16.mxu0 %v3528_v41 }
 0x384   :  { %1749 = vmatpush1.bf16.msra.mxu1 %v3403_v48 }
 0x385   :  { %1750 = vmatprep.subr.bf16.mxu1 %v3408_v49  ;;  %2604 = vmatpush1.bf16.msra.mxu0 %v3526_v42 }
 0x386   :  { %2605 = vmatprep.subr.bf16.mxu0 %v3534_v24  ;;  %v3587_v24 = vld [vmem:[%s4806_s11 + $0x240] ss:$28 sps:$4 sm:$0xff]  }
 0x388   :  { %1751 = vmatpush1.bf16.msra.mxu1 %v3406_v50 }
 0x389   :  { %1752 = vmatprep.subr.bf16.mxu1 %v3411_v51  ;;  %2606 = vmatpush1.bf16.msra.mxu0 %v3532_v28  ;;  %v3590_v28 = vld [vmem:[%s4806_s11 + $0x278] ss:$28 sps:$4 sm:$0xff]  }
 0x38a   :  { %2607 = vmatprep.subr.bf16.mxu0 %v3540_v31  ;;  %v3593_v31 = vld [vmem:[%s4806_s11 + $0x2b0] ss:$28 sps:$4 sm:$0xff]  }
 0x38c   :  { %1753 = vmatpush1.bf16.msra.mxu1 %v3409_v52 }
 0x38d   :  { %1754 = vmatprep.subr.bf16.mxu1 %v3414_v53  ;;  %2608 = vmatpush1.bf16.msra.mxu0 %v3538_v33  ;;  %v3596_v33 = vld [vmem:[%s4806_s11 + $0x2e8] ss:$28 sps:$4 sm:$0xff]  }
 0x38e   :  { %3092 = vmatprep.subr.bf16.mxu0 %v3544_v35  ;;  %v3599_v35 = vld [vmem:[%s4806_s11 + $0x320] ss:$28 sps:$4 sm:$0xff]  }
 0x390   :  { %1755 = vmatpush1.bf16.msra.mxu1 %v3412_v54 }
 0x391   :  { %1756 = vmatprep.subr.bf16.mxu1 %v3417_v55 }
 0x394   :  { %1757 = vmatpush1.bf16.msra.mxu1 %v3415_v56 }
 0x395   :  { %1758 = vmatprep.subr.bf16.mxu1 %v3420_v57 }
 0x398   :  { %1759 = vmatpush1.bf16.msra.mxu1 %v3418_v58 }
 0x399   :  { %1760 = vmatprep.subr.bf16.mxu1 %v3423_v59 }
 0x39c   :  { %1761 = vmatpush1.bf16.msra.mxu1 %v3421_v60  ;;  %v3445_v60 = vld [vmem:[%s4806_s11] ss:$28 sps:$4 sm:$0xff]  }
 0x39d   :  { %1762 = vmatprep.subr.bf16.mxu1 %v3426_v61  ;;  %v3453_v61 = vld [vmem:[%s4806_s11 + $0x3c] ss:$28 sps:$4 sm:$0xff]  }
 0x3a0   :  { %1763 = vmatpush1.bf16.msra.mxu1 %v3424_v62  ;;  %v3451_v62 = vld [vmem:[%s4806_s11 + $0x38] ss:$28 sps:$4 sm:$0xff]  }
 0x3a1   :  { %1764 = vmatprep.subr.bf16.mxu1 %v3429_v63  ;;  %v3459_v63 = vld [vmem:[%s4806_s11 + $0x74] ss:$28 sps:$4 sm:$0xff]  }
 0x3a4   :  { %1765 = vmatpush1.bf16.msra.mxu1 %v3427_v0  ;;  %v3457_v0 = vld [vmem:[%s4806_s11 + $0x70] ss:$28 sps:$4 sm:$0xff]  }
 0x3a5   :  { %1766 = vmatprep.subr.bf16.mxu1 %v3432_v1  ;;  %v3465_v1 = vld [vmem:[%s4806_s11 + $0xac] ss:$28 sps:$4 sm:$0xff]  }
 0x3a8   :  { %1767 = vmatpush1.bf16.msra.mxu1 %v3430_v2  ;;  %v3463_v2 = vld [vmem:[%s4806_s11 + $0xa8] ss:$28 sps:$4 sm:$0xff]  }
 0x3a9   :  { %1768 = vmatprep.subr.bf16.mxu1 %v3435_v3  ;;  %v3471_v3 = vld [vmem:[%s4806_s11 + $0xe4] ss:$28 sps:$4 sm:$0xff]  }
 0x3ac   :  { %1769 = vmatpush1.bf16.msra.mxu1 %v3433_v4  ;;  %v3469_v4 = vld [vmem:[%s4806_s11 + $0xe0] ss:$28 sps:$4 sm:$0xff]  }
 0x3ad   :  { %1770 = vmatprep.subr.bf16.mxu1 %v3438_v6  ;;  %v3477_v6 = vld [vmem:[%s4806_s11 + $0x11c] ss:$28 sps:$4 sm:$0xff]  }
 0x3b0   :  { %1771 = vmatpush1.bf16.msra.mxu1 %v3436_v7  ;;  %v3475_v7 = vld [vmem:[%s4806_s11 + $0x118] ss:$28 sps:$4 sm:$0xff]  }
 0x3b1   :  { %1772 = vmatprep.subr.bf16.mxu1 %v3441_v8  ;;  %v3483_v8 = vld [vmem:[%s4806_s11 + $0x154] ss:$28 sps:$4 sm:$0xff]  }
 0x3b4   :  { %1773 = vmatpush1.bf16.msra.mxu1 %v3439_v9  ;;  %v3481_v9 = vld [vmem:[%s4806_s11 + $0x150] ss:$28 sps:$4 sm:$0xff]  }
 0x3b5   :  { %1774 = vmatprep.subr.bf16.mxu1 %v3444_v10  ;;  %v3489_v10 = vld [vmem:[%s4806_s11 + $0x18c] ss:$28 sps:$4 sm:$0xff]  }
 0x3b8   :  { %1775 = vmatpush1.bf16.msra.mxu1 %v3442_v11  ;;  %v3487_v11 = vld [vmem:[%s4806_s11 + $0x188] ss:$28 sps:$4 sm:$0xff]  }
 0x3b9   :  { %2534 = vmatprep.subr.bf16.mxu1 %v3447_v12  ;;  %v3495_v12 = vld [vmem:[%s4806_s11 + $0x1c4] ss:$28 sps:$4 sm:$0xff]  }
 0x44e   :  { %v1525_v46 = vpop.f32.mrb[8].mxu1 }
 0x44f   :  { %v1526_v47 = vadd.f32 %v1525_v46, %v1404_v44  ;;  %v1527_v48 = vpop.f32.mrb[9].mxu1 }
 0x450   :  { %v1528_v49 = vadd.f32 %v1527_v48, %v1408_v45  ;;  %v1529_v50 = vpop.f32.mrb[10].mxu1 }
 0x451   :  { %v1530_v51 = vadd.f32 %v1529_v50, %v1404_v44  ;;  %v1531_v52 = vpop.f32.mrb[11].mxu1  ;;  %v1534_v54 = vmax.f32 %v1526_v47, 0.0 }
 0x452   :  { %v1532_v53 = vadd.f32 %v1531_v52, %v1408_v45  ;;  %v1535_v56 = vmax.f32 %v1528_v49, 0.0 }
 0x453   :  { %v1536_v55 = vmax.f32 %v1530_v51, 0.0 }
 0x454   :  { %v1537_v57 = vmax.f32 %v1532_v53, 0.0  ;;  %v3541_v53 = vld [vmem:[%s4806_s11 + $0x10] ss:$28 sps:$4 sm:$0xff]  }
 0x455   :  { %v1538_v58 = vpack.c.bf16 %v1536_v55, %v1534_v54  ;;  %v3545_v54 = vld [vmem:[%s4806_s11 + $0x18] ss:$28 sps:$4 sm:$0xff]   ;;  %v3548_v55 = vld [vmem:[%s4806_s11 + $0x4c] ss:$28 sps:$4 sm:$0xff]  }
 0x456   :  { %v1539_v59 = vpack.c.bf16 %v1537_v57, %v1535_v56  ;;  %v3549_v56 = vld [vmem:[%s4806_s11 + $0x210] ss:$28 sps:$4 sm:$0xff]   ;;  %v3546_v57 = vld [vmem:[%s4806_s11 + $0x48] ss:$28 sps:$4 sm:$0xff]  }
 0x458   :  { %1776 = vmatprep.mubr.bf16.mxu1 %v1539_v59  ;;  %v3553_v59 = vld [vmem:[%s4806_s11 + $0x84] ss:$28 sps:$4 sm:$0xff]  }
 0x459   :  { %1777 = vmatmul.mubr.bf16.vlgmr.msra.gmra.mrb[12].mxu1 %v1538_v58  ;;  %v3550_v58 = vld [vmem:[%s4806_s11 + $0x50] ss:$28 sps:$4 sm:$0xff]  }
 0x45a   :  { %2535 = vmatpush1.bf16.msra.mxu1 %v3445_v60  ;;  %v3554_v60 = vld [vmem:[%s4806_s11 + $0x248] ss:$28 sps:$4 sm:$0xff]  }
 0x45b   :  { %2536 = vmatprep.subr.bf16.mxu1 %v3453_v61  ;;  %v3551_v61 = vld [vmem:[%s4806_s11 + $0x80] ss:$28 sps:$4 sm:$0xff]  }
 0x45e   :  { %2537 = vmatpush1.bf16.msra.mxu1 %v3451_v62  ;;  %v3555_v62 = vld [vmem:[%s4806_s11 + $0x88] ss:$28 sps:$4 sm:$0xff]  }
 0x45f   :  { %2538 = vmatprep.subr.bf16.mxu1 %v3459_v63  ;;  %v3558_v63 = vld [vmem:[%s4806_s11 + $0xbc] ss:$28 sps:$4 sm:$0xff]  }
 0x462   :  { %2539 = vmatpush1.bf16.msra.mxu1 %v3457_v0  ;;  %v3559_v0 = vld [vmem:[%s4806_s11 + $0x280] ss:$28 sps:$4 sm:$0xff]  }
 0x463   :  { %2540 = vmatprep.subr.bf16.mxu1 %v3465_v1  ;;  %v3556_v1 = vld [vmem:[%s4806_s11 + $0xb8] ss:$28 sps:$4 sm:$0xff]  }
 0x466   :  { %2541 = vmatpush1.bf16.msra.mxu1 %v3463_v2  ;;  %v3560_v2 = vld [vmem:[%s4806_s11 + $0xc0] ss:$28 sps:$4 sm:$0xff]  }
 0x467   :  { %2542 = vmatprep.subr.bf16.mxu1 %v3471_v3  ;;  %v3563_v3 = vld [vmem:[%s4806_s11 + $0xf4] ss:$28 sps:$4 sm:$0xff]  }
 0x46a   :  { %2543 = vmatpush1.bf16.msra.mxu1 %v3469_v4  ;;  %v3564_v4 = vld [vmem:[%s4806_s11 + $0x2b8] ss:$28 sps:$4 sm:$0xff]  }
 0x46b   :  { %2544 = vmatprep.subr.bf16.mxu1 %v3477_v6  ;;  %v3561_v6 = vld [vmem:[%s4806_s11 + $0xf0] ss:$28 sps:$4 sm:$0xff]  }
 0x46e   :  { %2545 = vmatpush1.bf16.msra.mxu1 %v3475_v7  ;;  %v3565_v7 = vld [vmem:[%s4806_s11 + $0xf8] ss:$28 sps:$4 sm:$0xff]  }
 0x46f   :  { %2546 = vmatprep.subr.bf16.mxu1 %v3483_v8  ;;  %v3568_v8 = vld [vmem:[%s4806_s11 + $0x12c] ss:$28 sps:$4 sm:$0xff]  }
 0x472   :  { %2547 = vmatpush1.bf16.msra.mxu1 %v3481_v9  ;;  %v3569_v9 = vld [vmem:[%s4806_s11 + $0x2f0] ss:$28 sps:$4 sm:$0xff]  }
 0x473   :  { %2548 = vmatprep.subr.bf16.mxu1 %v3489_v10  ;;  %v3566_v10 = vld [vmem:[%s4806_s11 + $0x128] ss:$28 sps:$4 sm:$0xff]  }
 0x476   :  { %2549 = vmatpush1.bf16.msra.mxu1 %v3487_v11  ;;  %v3570_v11 = vld [vmem:[%s4806_s11 + $0x130] ss:$28 sps:$4 sm:$0xff]  }
 0x477   :  { %2550 = vmatprep.subr.bf16.mxu1 %v3495_v12  ;;  %v3573_v12 = vld [vmem:[%s4806_s11 + $0x164] ss:$28 sps:$4 sm:$0xff]  }
 0x47a   :  { %2551 = vmatpush1.bf16.msra.mxu1 %v3493_v13  ;;  %v3574_v13 = vld [vmem:[%s4806_s11 + $0x328] ss:$28 sps:$4 sm:$0xff]  }
 0x47b   :  { %2552 = vmatprep.subr.bf16.mxu1 %v3501_v14  ;;  %v3571_v14 = vld [vmem:[%s4806_s11 + $0x160] ss:$28 sps:$4 sm:$0xff]  }
 0x47e   :  { %2553 = vmatpush1.bf16.msra.mxu1 %v3499_v15  ;;  %v3575_v15 = vld [vmem:[%s4806_s11 + $0x168] ss:$28 sps:$4 sm:$0xff]  }
 0x47f   :  { %2554 = vmatprep.subr.bf16.mxu1 %v3507_v16  ;;  %v3578_v16 = vld [vmem:[%s4806_s11 + $0x19c] ss:$28 sps:$4 sm:$0xff]  }
 0x482   :  { %2555 = vmatpush1.bf16.msra.mxu1 %v3505_v17  ;;  %v3579_v17 = vld [vmem:[%s4806_s11 + $0x360] ss:$28 sps:$4 sm:$0xff]  }
 0x483   :  { %2556 = vmatprep.subr.bf16.mxu1 %v3513_v18  ;;  %v3576_v18 = vld [vmem:[%s4806_s11 + $0x198] ss:$28 sps:$4 sm:$0xff]  }
 0x486   :  { %2557 = vmatpush1.bf16.msra.mxu1 %v3511_v19  ;;  %v3580_v19 = vld [vmem:[%s4806_s11 + $0x1a0] ss:$28 sps:$4 sm:$0xff]  }
 0x487   :  { %2558 = vmatprep.subr.bf16.mxu1 %v3519_v20  ;;  %v3583_v20 = vld [vmem:[%s4806_s11 + $0x1d4] ss:$28 sps:$4 sm:$0xff]  }
 0x48a   :  { %2559 = vmatpush1.bf16.msra.mxu1 %v3517_v21  ;;  %v3581_v21 = vld [vmem:[%s4806_s11 + $0x1d0] ss:$28 sps:$4 sm:$0xff]  }
 0x48b   :  { %2560 = vmatprep.subr.bf16.mxu1 %v3525_v5  ;;  %v3586_v5 = vld [vmem:[%s4806_s11 + $0x20c] ss:$28 sps:$4 sm:$0xff]  }
 0x48e   :  { %2561 = vmatpush1.bf16.msra.mxu1 %v3523_v22  ;;  %v3584_v22 = vld [vmem:[%s4806_s11 + $0x208] ss:$28 sps:$4 sm:$0xff]  }
 0x48f   :  { %2562 = vmatprep.subr.bf16.mxu1 %v3531_v23  ;;  %v3589_v23 = vld [vmem:[%s4806_s11 + $0x244] ss:$28 sps:$4 sm:$0xff]  }
 0x492   :  { %2563 = vmatpush1.bf16.msra.mxu1 %v3529_v25  ;;  %v3592_v25 = vld [vmem:[%s4806_s11 + $0x27c] ss:$28 sps:$4 sm:$0xff]  }
 0x493   :  { %2564 = vmatprep.subr.bf16.mxu1 %v3537_v30  ;;  %v3595_v30 = vld [vmem:[%s4806_s11 + $0x2b4] ss:$28 sps:$4 sm:$0xff]  }
 0x496   :  { %2565 = vmatpush1.bf16.msra.mxu1 %v3535_v32  ;;  %v3598_v32 = vld [vmem:[%s4806_s11 + $0x2ec] ss:$28 sps:$4 sm:$0xff]  }
 0x497   :  { %2620 = vmatprep.subr.bf16.mxu1 %v3543_v34  ;;  %v3601_v34 = vld [vmem:[%s4806_s11 + $0x324] ss:$28 sps:$4 sm:$0xff]  }
 0x52c   :  { %v1778_v39 = vpop.f32.mrb[12].mxu1 }
 0x52d   :  { %v1779_v40 = vadd.f32 %v1778_v39, %v1577_v37  ;;  %v1780_v41 = vpop.f32.mrb[13].mxu1  ;;  %v4739_v39 = vld [vmem:[%s4809_s12] sm:$0xff] }
 0x52e   :  { %v1781_v42 = vadd.f32 %v1780_v41, %v1581_v38  ;;  %v1782_v43 = vpop.f32.mrb[14].mxu1  ;;  %v1926_v41 = vrot.slane %v4739_v39, %v4169_v27 }
 0x52f   :  { %v1783_v44 = vadd.f32 %v1782_v43, %v1577_v37  ;;  %v1784_v45 = vpop.f32.mrb[15].mxu1  ;;  %v1787_v47 = vmax.f32 %v1779_v40, 0.0  ;;  %v3602_v37 = vld [vmem:[%s4806_s11 + $0x358] ss:$28 sps:$4 sm:$0xff]   ;;  %v1937_v40 = vsub.s32 3, %v4166_v26  ;;  %v1930_v43 = vrot.slane %v4739_v39, %v4175_v29 }
 0x530   :  { %v1785_v46 = vadd.f32 %v1784_v45, %v1581_v38  ;;  %v1788_v49 = vmax.f32 %v1781_v42, 0.0  ;;  %v1933_v38 = vsub.s32 2, %v4166_v26 }
 0x531   :  { %v1789_v48 = vmax.f32 %v1783_v44, 0.0  ;;  %v1938_v44 = vrot.slane %v4739_v39, %v1937_v40 }
 0x532   :  { %v1790_v50 = vmax.f32 %v1785_v46, 0.0  ;;  %v1934_v42 = vrot.slane %v4739_v39, %v1933_v38 }
 0x533   :  { %v4591_v51 = vpack.c.bf16 %v1789_v48, %v1787_v47 }
 0x534   :  { %v1792_v52 = vpack.c.bf16 %v1790_v50, %v1788_v49 }
 0x536   :  { %2566 = vmatprep.mubr.bf16.mxu1 %v1792_v52  ;;  %2609 = vmatprep.mubr.bf16.mxu0 %v1792_v52 }
 0x537   :  { %2567 = vmatmul.mubr.bf16.vlgmr.msra.gmra.mrb[16].mxu1 %v4591_v51  ;;  %2610 = vmatmul.mubr.bf16.vlgmr.msra.gmra.mrb[4].mxu0 %v4591_v51 }
 0x538   :  { %2621 = vmatpush1.bf16.msra.mxu1 %v3541_v53  ;;  %3093 = vmatpush3.bf16.msra.mxu0 %v3545_v54 }
 0x539   :  { %2652 = vmatprep.mubr.bf16.mxu1 %v1792_v52  ;;  %2695 = vmatprep.mubr.bf16.mxu0 %v1792_v52 }
 0x53a   :  { %2622 = vmatprep.subr.bf16.mxu1 %v3548_v55  ;;  %3094 = vmatprep.subr.bf16.mxu0 %v3549_v56 }
 0x53c   :  { %2623 = vmatpush1.bf16.msra.mxu1 %v3546_v57  ;;  %3095 = vmatpush3.bf16.msra.mxu0 %v3550_v58 }
 0x53d   :  { %2624 = vmatprep.subr.bf16.mxu1 %v3553_v59  ;;  %3096 = vmatprep.subr.bf16.mxu0 %v3554_v60 }
 0x540   :  { %2625 = vmatpush1.bf16.msra.mxu1 %v3551_v61  ;;  %3097 = vmatpush3.bf16.msra.mxu0 %v3555_v62 }
 0x541   :  { %2626 = vmatprep.subr.bf16.mxu1 %v3558_v63  ;;  %3098 = vmatprep.subr.bf16.mxu0 %v3559_v0 }
 0x544   :  { %2627 = vmatpush1.bf16.msra.mxu1 %v3556_v1  ;;  %3099 = vmatpush3.bf16.msra.mxu0 %v3560_v2 }
 0x545   :  { %2628 = vmatprep.subr.bf16.mxu1 %v3563_v3  ;;  %3100 = vmatprep.subr.bf16.mxu0 %v3564_v4  ;;  %v1949_v3 = vsub.s32 6, %v4166_v26 }
 0x548   :  { %2629 = vmatpush1.bf16.msra.mxu1 %v3561_v6  ;;  %3101 = vmatpush3.bf16.msra.mxu0 %v3565_v7  ;;  %v1950_v6 = vrot.slane %v4739_v39, %v1949_v3 }
 0x549   :  { %2630 = vmatprep.subr.bf16.mxu1 %v3568_v8  ;;  %3102 = vmatprep.subr.bf16.mxu0 %v3569_v9 }
 0x54c   :  { %2631 = vmatpush1.bf16.msra.mxu1 %v3566_v10  ;;  %3103 = vmatpush3.bf16.msra.mxu0 %v3570_v11 }
 0x54d   :  { %2632 = vmatprep.subr.bf16.mxu1 %v3573_v12  ;;  %3104 = vmatprep.subr.bf16.mxu0 %v3574_v13 }
 0x550   :  { %2633 = vmatpush1.bf16.msra.mxu1 %v3571_v14  ;;  %3105 = vmatpush3.bf16.msra.mxu0 %v3575_v15 }
 0x551   :  { %2634 = vmatprep.subr.bf16.mxu1 %v3578_v16  ;;  %3106 = vmatprep.subr.bf16.mxu0 %v3579_v17  ;;  %v1941_v16 = vsub.s32 4, %v4166_v26  ;;  %v1945_v17 = vsub.s32 5, %v4166_v26 }
 0x554   :  { %2635 = vmatpush1.bf16.msra.mxu1 %v3576_v18  ;;  %3107 = vmatpush3.bf16.msra.mxu0 %v3580_v19  ;;  %v1942_v18 = vrot.slane %v4739_v39, %v1941_v16  ;;  %v1946_v19 = vrot.slane %v4739_v39, %v1945_v17 }
 0x555   :  { %2636 = vmatprep.subr.bf16.mxu1 %v3583_v20 }
 0x557   :  { %2696 = vmatmul.mubr.bf16.vlgmr.msra.gmra.mrb[8].mxu0 %v4591_v51 }
 0x558   :  { %2637 = vmatpush1.bf16.msra.mxu1 %v3581_v21 }
 0x559   :  { %2638 = vmatprep.subr.bf16.mxu1 %v3586_v5 }
 0x55c   :  { %2639 = vmatpush1.bf16.msra.mxu1 %v3584_v22 }
 0x55d   :  { %2640 = vmatprep.subr.bf16.mxu1 %v3589_v23 }
 0x560   :  { %2641 = vmatpush1.bf16.msra.mxu1 %v3587_v24 }
 0x561   :  { %2642 = vmatprep.subr.bf16.mxu1 %v3592_v25 }
 0x564   :  { %2643 = vmatpush1.bf16.msra.mxu1 %v3590_v28 }
 0x565   :  { %2644 = vmatprep.subr.bf16.mxu1 %v3595_v30 }
 0x568   :  { %2645 = vmatpush1.bf16.msra.mxu1 %v3593_v31 }
 0x569   :  { %2646 = vmatprep.subr.bf16.mxu1 %v3598_v32 }
 0x56c   :  { %2647 = vmatpush1.bf16.msra.mxu1 %v3596_v33 }
 0x56d   :  { %2648 = vmatprep.subr.bf16.mxu1 %v3601_v34 }
 0x570   :  { %2649 = vmatpush1.bf16.msra.mxu1 %v3599_v35 }
 0x571   :  { %2650 = vmatprep.subr.bf16.mxu1 %v3604_v36 }
 0x574   :  { %2651 = vmatpush1.bf16.msra.mxu1 %v3602_v37 }
 0x577   :  { %2653 = vmatmul.mubr.bf16.vlgmr.msra.gmra.mrb[20].mxu1 %v4591_v51 }
 0x60a   :  { %v2568_v45 = vpop.f32.mrb[16].mxu1  ;;  %v2611_v46 = vpop.f32.mrb[4].mxu0 }
 0x60b   :  { %v2569_v47 = vadd.f32 %v2568_v45, %v1926_v41  ;;  %v2612_v48 = vadd.f32 %v2611_v46, %v1934_v42  ;;  %v2570_v49 = vpop.f32.mrb[17].mxu1  ;;  %v2613_v50 = vpop.f32.mrb[5].mxu0 }
 0x60c   :  { %v2571_v51 = vadd.f32 %v2570_v49, %v1930_v43  ;;  %v2614_v52 = vadd.f32 %v2613_v50, %v1938_v44  ;;  %v2572_v53 = vpop.f32.mrb[18].mxu1  ;;  %v2615_v54 = vpop.f32.mrb[6].mxu0 }
 0x60d   :  { %3605 = vtanh.f32 %v2569_v47  ;;  %v2573_v55 = vadd.f32 %v2572_v53, %v1926_v41  ;;  %v2574_v27 = vpop.f32.mrb[19].mxu1  ;;  %v2617_v56 = vpop.f32.mrb[7].mxu0  ;;  %v2616_v57 = vadd.f32 %v2615_v54, %v1934_v42 }
 0x60e   :  { %3607 = vtanh.f32 %v2612_v48  ;;  %v2575_v29 = vadd.f32 %v2574_v27, %v1930_v43  ;;  %v2618_v58 = vadd.f32 %v2617_v56, %v1938_v44 }
 0x60f   :  { %3609 = vtanh.f32 %v2571_v51 }
 0x610   :  { %3611 = vtanh.f32 %v2614_v52 }
 0x611   :  { %3613 = vtanh.f32 %v2573_v55 }
 0x612   :  { %3615 = vtanh.f32 %v2616_v57 }
 0x613   :  { %3617 = vtanh.f32 %v2575_v29 }
 0x614   :  { %3619 = vtanh.f32 %v2618_v58 }
 0x617   :  { %v3606_v59 = vpop.eup %3605 }
 0x618   :  { %v3608_v60 = vpop.eup %3607  ;;  %2718 = vst [vmem:[%s4810_s13] sm:$0xff] %v3606_v59 }
 0x619   :  { %v3610_v61 = vpop.eup %3609  ;;  %2720 = vst [vmem:[%s4810_s13 + $0x10] sm:$0xff] %v3608_v60 }
 0x61a   :  { %v3612_v62 = vpop.eup %3611  ;;  %2719 = vst [vmem:[%s4810_s13 + $0x8] sm:$0xff] %v3610_v61 }
 0x61b   :  { %v3614_v63 = vpop.eup %3613  ;;  %2721 = vst [vmem:[%s4810_s13 + $0x18] sm:$0xff] %v3612_v62 }
 0x61c   :  { %v3616_v0 = vpop.eup %3615  ;;  %2725 = vst [vmem:[%s4810_s13 + $0x38] sm:$0xff] %v3614_v63 }
 0x61d   :  { %v3618_v1 = vpop.eup %3617  ;;  %2727 = vst [vmem:[%s4810_s13 + $0x48] sm:$0xff] %v3616_v0 }
 0x61e   :  { %v3620_v2 = vpop.eup %3619  ;;  %2726 = vst [vmem:[%s4810_s13 + $0x40] sm:$0xff] %v3618_v1 }
 0x61f   :  { %2728 = vst [vmem:[%s4810_s13 + $0x50] sm:$0xff] %v3620_v2 }
 0x62a   :  { %v3108_v4 = vpop.f32.mrb[8].mxu0 }
 0x62b   :  { %v3109_v7 = vpop.f32.mrb[9].mxu0 }
 0x62c   :  { %v3110_v8 = vadd.f32 %v3109_v7, %v3108_v4  ;;  %v3111_v9 = vpop.f32.mrb[10].mxu0 }
 0x62d   :  { %v3112_v10 = vpop.f32.mrb[11].mxu0 }
 0x62e   :  { %v2698_v11 = vadd.f32 %v3110_v8, %v1950_v6  ;;  %v3113_v12 = vadd.f32 %v3112_v10, %v3111_v9 }
 0x630   :  { %3621 = vtanh.f32 %v2698_v11  ;;  %v2701_v13 = vadd.f32 %v3113_v12, %v1950_v6 }
 0x632   :  { %3623 = vtanh.f32 %v2701_v13 }
 0x63a   :  { %v3622_v14 = vpop.eup %3621 }
 0x63b   :  { %2724 = vst [vmem:[%s4810_s13 + $0x30] sm:$0xff] %v3622_v14 }
 0x63c   :  { %v3624_v15 = vpop.eup %3623 }
 0x63d   :  { %2731 = vst [vmem:[%s4810_s13 + $0x68] sm:$0xff] %v3624_v15 }
 0x64a   :  { %v2654_v20 = vpop.f32.mrb[20].mxu1 }
 0x64b   :  { %v2655_v21 = vadd.f32 %v2654_v20, %v1942_v18  ;;  %v2656_v5 = vpop.f32.mrb[21].mxu1 }
 0x64c   :  { %v2657_v22 = vadd.f32 %v2656_v5, %v1946_v19  ;;  %v2658_v23 = vpop.f32.mrb[22].mxu1 }
 0x64d   :  { %3625 = vtanh.f32 %v2655_v21  ;;  %v2659_v24 = vadd.f32 %v2658_v23, %v1942_v18  ;;  %v2660_v25 = vpop.f32.mrb[23].mxu1 }
 0x64e   :  { %3627 = vtanh.f32 %v2657_v22  ;;  %v2661_v28 = vadd.f32 %v2660_v25, %v1946_v19 }
 0x64f   :  { %3629 = vtanh.f32 %v2659_v24 }
 0x650   :  { %3631 = vtanh.f32 %v2661_v28 }
 0x657   :  { %v3626_v30 = vpop.eup %3625 }
 0x658   :  { %v3628_v31 = vpop.eup %3627  ;;  %2722 = vst [vmem:[%s4810_s13 + $0x20] sm:$0xff] %v3626_v30 }
 0x659   :  { %v3630_v26 = vpop.eup %3629  ;;  %2723 = vst [vmem:[%s4810_s13 + $0x28] sm:$0xff] %v3628_v31 }
 0x65a   :  { %v3632_v32 = vpop.eup %3631  ;;  %2729 = vst [vmem:[%s4810_s13 + $0x58] sm:$0xff] %v3630_v26 }
 0x65b   :  { %2730 = vst [vmem:[%s4810_s13 + $0x60] sm:$0xff] %v3632_v32 }

</bundles_post_ra>
